<compile_context>
chip_gen: v7x
topology: tpu7x:2x2x1
jax: 0.10.0
libtpu: 0.0.40
codegen_flags: <defaults>
</compile_context>

<pallas_src>
import math

import numpy as np
import jax
import jax.numpy as jnp
from jax.experimental import pallas as pl
from jax.experimental.pallas import tpu as pltpu

# ----------------------------- scaled-down config ----------------------------
HIDDEN = 32
HEADS = 4
HEAD_DIM = HIDDEN // HEADS
LAYERS = 2
IMG = 16
PATCH = 8
CHANNELS = 3
INTER = 4 * HIDDEN
EPS = 1e-12                      # HF ViTConfig layer_norm_eps default
BATCH = 2
NUM_PATCHES = (IMG // PATCH) ** 2
SEQ = NUM_PATCHES + 1
PATCH_DIM = CHANNELS * PATCH * PATCH
SCALE = 1.0 / math.sqrt(HEAD_DIM)

ENC_ROWS = BATCH * HEADS * SEQ           # expanded rows for encoder attention (40)
MHA_ROWS = SEQ * HEADS * BATCH           # expanded rows for trailing MHA       (40)
SLAB_WIDTH = 128
assert HEADS * HIDDEN <= SLAB_WIDTH

# ----------------------------- packed-constant layout -------------------------
_LAYOUT = [
    ("patch_w", PATCH_DIM, HIDDEN),
    ("tokbias", BATCH * SEQ, HIDDEN),
    ("Epos", BATCH * SEQ, BATCH * NUM_PATCHES),
    ("Rep", HIDDEN, HEADS * HIDDEN),
    ("Eenc", ENC_ROWS, BATCH * SEQ),
    ("ETenc", BATCH * SEQ, ENC_ROWS),
    ("maskA_enc", ENC_ROWS, HEADS * HIDDEN),
    ("addmask_enc", ENC_ROWS, ENC_ROWS),
    ("Emha", MHA_ROWS, BATCH * SEQ),
    ("ETmha", BATCH * SEQ, MHA_ROWS),
    ("maskA_mha", MHA_ROWS, HEADS * HIDDEN),
    ("addmask_mha", MHA_ROWS, MHA_ROWS),
]
for _l in range(LAYERS):
    _LAYOUT += [
        (f"Wstk{_l}", HEADS * HIDDEN, 2 * HEAD_DIM + HIDDEN),
        (f"biasx{_l}", ENC_ROWS, 2 * HEAD_DIM + HIDDEN),
        (f"Wo{_l}", HIDDEN, HIDDEN),
        (f"bo{_l}", 1, HIDDEN),
        (f"W1_{_l}", HIDDEN, INTER),
        (f"b1_{_l}", 1, INTER),
        (f"W2_{_l}", INTER, HIDDEN),
        (f"b2_{_l}", 1, HIDDEN),
    ]
_LAYOUT += [
    ("Wstk_mha", HEADS * HIDDEN, 2 * HEAD_DIM + HIDDEN),
    ("biasx_mha", MHA_ROWS, 2 * HEAD_DIM + HIDDEN),
    ("Wo_mha", HIDDEN, HIDDEN),
    ("bo_mha", 1, HIDDEN),
]


def _build_offsets(layout):
    offs, cur = {}, 0
    for name, r, c in layout:
        assert c <= SLAB_WIDTH, (name, c)
        offs[name] = (cur, r, c)
        cur += ((r + 7) // 8) * 8          # keep every block 8-sublane aligned
    return offs, cur


_OFFS, _SLAB_ROWS = _build_offsets(_LAYOUT)


# Expanded-row decompositions (row -> (source row in the (B*SEQ,H) residual, head)).
def _enc_row(r):                                   # r = b*(HEADS*SEQ) + h*SEQ + s
    b = r // (HEADS * SEQ)
    h = (r // SEQ) % HEADS
    s = r % SEQ
    return b * SEQ + s, h


def _mha_row(r):                                   # r = n*(HEADS*B) + h*B + l
    n = r // (HEADS * BATCH)
    h = (r // BATCH) % HEADS
    l = r % BATCH
    return l * SEQ + n, h


# ----------------------------- fused kernel ----------------------------------
def _fused_vit_anomaly_kernel(patches_ref, slab_ref, out_ref):
    f32 = jnp.float32

    def cut(name):
        off, r, c = _OFFS[name]
        return slab_ref[off:off + r, 0:c]

    def normalize(v):                              # LN without gamma/beta (folded host-side)
        m = jnp.mean(v, axis=-1, keepdims=True)
        d = v - m
        var = jnp.mean(d * d, axis=-1, keepdims=True)
        return d * jax.lax.rsqrt(var + EPS)

    def gelu(v):
        # TODO(synk): exact-erf GELU (HF ViT) approximated with the tanh form (~1e-3 max dev).
        c = 0.7978845608028654
        return 0.5 * v * (1.0 + jnp.tanh(c * (v + 0.044715 * v * v * v)))

    rep = cut("Rep")                               # (H, HEADS*H) lane-replication constant

    def grouped_attention(xn, e, et, mask_a, add_mask, w_stk, bias_x, w_o, b_o):
        # xn: (R, H) normalized residual rows (R = B*SEQ = 10)
        xrep = jnp.dot(xn, rep, preferred_element_type=f32)              # (R, HEADS*H)
        xe = jnp.dot(e, xrep, preferred_element_type=f32) * mask_a       # (G, HEADS*H)
        qkv = jnp.dot(xe, w_stk, preferred_element_type=f32) + bias_x    # (G, 2*dh + H)
        qx = qkv[:, 0:HEAD_DIM]                                          # (G, dh), pre-scaled
        kx = qkv[:, HEAD_DIM:2 * HEAD_DIM]                               # (G, dh)
        vw = qkv[:, 2 * HEAD_DIM:2 * HEAD_DIM + HIDDEN]                  # (G, H) block-placed
        s = jax.lax.dot_general(qx, kx, (((1,), (1,)), ((), ())),
                                preferred_element_type=f32) + add_mask   # (G, G)
        s = s - jnp.max(s, axis=-1, keepdims=True)
        p = jnp.exp(s)
        p = p * pl.reciprocal(jnp.sum(p, axis=-1, keepdims=True), approx=False)
        pvw = jnp.dot(p, vw, preferred_element_type=f32)                 # (G, H)
        packed = jnp.dot(et, pvw, preferred_element_type=f32)            # (R, H) lane-dense
        return jnp.dot(packed, w_o, preferred_element_type=f32) + b_o

    # ---- patch embedding + CLS + position embeddings (concat-free) ----
    emb = jnp.dot(patches_ref[...], cut("patch_w"), preferred_element_type=f32)   # (B*NP, H)
    x = jnp.dot(cut("Epos"), emb, preferred_element_type=f32) + cut("tokbias")    # (B*SEQ, H)

    # ---- ViT encoder, layers unrolled, everything VMEM resident ----
    e_enc, et_enc = cut("Eenc"), cut("ETenc")
    ma_enc, am_enc = cut("maskA_enc"), cut("addmask_enc")
    for l in range(LAYERS):
        xn = normalize(x)
        x = x + grouped_attention(xn, e_enc, et_enc, ma_enc, am_enc,
                                  cut(f"Wstk{l}"), cut(f"biasx{l}"),
                                  cut(f"Wo{l}"), cut(f"bo{l}"))
        xn2 = normalize(x)
        inter = gelu(jnp.dot(xn2, cut(f"W1_{l}"), preferred_element_type=f32) + cut(f"b1_{l}"))
        x = x + jnp.dot(inter, cut(f"W2_{l}"), preferred_element_type=f32) + cut(f"b2_{l}")

    # ---- final ViT layernorm (folded into MHA in-proj) + trailing MultiheadAttention ----
    # nn.MultiheadAttention (batch_first=False): sequence = the B=2 images, batch = tokens.
    xnf = normalize(x)
    y = grouped_attention(xnf, cut("Emha"), cut("ETmha"),
                          cut("maskA_mha"), cut("addmask_mha"),
                          cut("Wstk_mha"), cut("biasx_mha"),
                          cut("Wo_mha"), cut("bo_mha"))
    out_ref[...] = y.astype(out_ref.dtype)


# ----------------------------- host-side param prep ---------------------------
def init_raw_params(key):
    keys = iter(jax.random.split(key, 48))

    def randn(shape, scale=0.02):
        return np.asarray(scale * jax.random.normal(next(keys), shape), np.float32)

    def gamma(shape):
        return np.asarray(1.0 + 0.02 * jax.random.normal(next(keys), shape), np.float32)

    raw = {
        "patch_w": randn((PATCH_DIM, HIDDEN)), "patch_b": randn((HIDDEN,)),
        "cls": randn((HIDDEN,)), "pos": randn((SEQ, HIDDEN)),
        "fln_g": gamma((HIDDEN,)), "fln_b": randn((HIDDEN,)),
        "mha_in_w": randn((HIDDEN, 3 * HIDDEN)), "mha_in_b": randn((3 * HIDDEN,)),
        "mha_out_w": randn((HIDDEN, HIDDEN)), "mha_out_b": randn((HIDDEN,)),
        "layers": [],
    }
    for _ in range(LAYERS):
        raw["layers"].append({
            "ln1_g": gamma((HIDDEN,)), "ln1_b": randn((HIDDEN,)),
            "wq": randn((HIDDEN, HIDDEN)), "bq": randn((HIDDEN,)),
            "wk": randn((HIDDEN, HIDDEN)), "bk": randn((HIDDEN,)),
            "wv": randn((HIDDEN, HIDDEN)), "bv": randn((HIDDEN,)),
            "wo": randn((HIDDEN, HIDDEN)), "bo": randn((HIDDEN,)),
            "ln2_g": gamma((HIDDEN,)), "ln2_b": randn((HIDDEN,)),
            "w1": randn((HIDDEN, INTER)), "b1": randn((INTER,)),
            "w2": randn((INTER, HIDDEN)), "b2": randn((HIDDEN,)),
        })
    return raw


def _fold_attention(g, beta, wq, bq, wk, bk, wv, bv, scale, nrows, rowfn):
    """Fold LN gamma/beta + qkv biases + softmax scale into a stacked per-head projection."""
    dh = HEAD_DIM
    w_stk = np.zeros((HEADS * HIDDEN, 2 * dh + HIDDEN), np.float32)
    for h in range(HEADS):
        rows = slice(h * HIDDEN, (h + 1) * HIDDEN)
        cols = slice(h * dh, (h + 1) * dh)
        w_stk[rows, 0:dh] = (g[:, None] * wq[:, cols]) * scale
        w_stk[rows, dh:2 * dh] = g[:, None] * wk[:, cols]
        w_stk[rows, 2 * dh + h * dh:2 * dh + (h + 1) * dh] = g[:, None] * wv[:, cols]
    bias_x = np.zeros((nrows, 2 * dh + HIDDEN), np.float32)
    for r in range(nrows):
        _, h = rowfn(r)
        cols = slice(h * dh, (h + 1) * dh)
        bias_x[r, 0:dh] = (beta @ wq[:, cols] + bq[cols]) * scale
        bias_x[r, dh:2 * dh] = beta @ wk[:, cols] + bk[cols]
        bias_x[r, 2 * dh + h * dh:2 * dh + (h + 1) * dh] = beta @ wv[:, cols] + bv[cols]
    return w_stk, bias_x


def pack_params(raw):
    vals = {"patch_w": raw["patch_w"]}

    tokbias = np.zeros((BATCH * SEQ, HIDDEN), np.float32)
    epos = np.zeros((BATCH * SEQ, BATCH * NUM_PATCHES), np.float32)
    for b in range(BATCH):
        tokbias[b * SEQ + 0] = raw["cls"] + raw["pos"][0]
        for s in range(1, SEQ):
            tokbias[b * SEQ + s] = raw["patch_b"] + raw["pos"][s]
            epos[b * SEQ + s, b * NUM_PATCHES + s - 1] = 1.0
    vals["tokbias"], vals["Epos"] = tokbias, epos

    rep = np.zeros((HIDDEN, HEADS * HIDDEN), np.float32)
    for h in range(HEADS):
        rep[:, h * HIDDEN:(h + 1) * HIDDEN] = np.eye(HIDDEN, dtype=np.float32)
    vals["Rep"] = rep

    def group_consts(nrows, gsize, rowfn):
        e = np.zeros((nrows, BATCH * SEQ), np.float32)
        mask_a = np.zeros((nrows, HEADS * HIDDEN), np.float32)
        add_m = np.full((nrows, nrows), -1e30, np.float32)
        for r in range(nrows):
            src, h = rowfn(r)
            e[r, src] = 1.0
            mask_a[r, h * HIDDEN:(h + 1) * HIDDEN] = 1.0
            grp = r // gsize
            add_m[r, grp * gsize:(grp + 1) * gsize] = 0.0
        return e, mask_a, add_m

    e_enc, ma_enc, am_enc = group_consts(ENC_ROWS, SEQ, _enc_row)
    e_mha, ma_mha, am_mha = group_consts(MHA_ROWS, BATCH, _mha_row)
    vals.update({"Eenc": e_enc, "ETenc": np.ascontiguousarray(e_enc.T),
                 "maskA_enc": ma_enc, "addmask_enc": am_enc,
                 "Emha": e_mha, "ETmha": np.ascontiguousarray(e_mha.T),
                 "maskA_mha": ma_mha, "addmask_mha": am_mha})

    for l, L in enumerate(raw["layers"]):
        w_stk, bias_x = _fold_attention(L["ln1_g"], L["ln1_b"], L["wq"], L["bq"],
                                        L["wk"], L["bk"], L["wv"], L["bv"],
                                        SCALE, ENC_ROWS, _enc_row)
        vals[f"Wstk{l}"], vals[f"biasx{l}"] = w_stk, bias_x
        vals[f"Wo{l}"] = L["wo"]
        vals[f"bo{l}"] = L["bo"].reshape(1, HIDDEN)
        vals[f"W1_{l}"] = L["ln2_g"][:, None] * L["w1"]
        vals[f"b1_{l}"] = (L["ln2_b"] @ L["w1"] + L["b1"]).reshape(1, INTER)
        vals[f"W2_{l}"] = L["w2"]
        vals[f"b2_{l}"] = L["b2"].reshape(1, HIDDEN)

    wi, bi = raw["mha_in_w"], raw["mha_in_b"]
    w_stk, bias_x = _fold_attention(raw["fln_g"], raw["fln_b"],
                                    wi[:, 0:HIDDEN], bi[0:HIDDEN],
                                    wi[:, HIDDEN:2 * HIDDEN], bi[HIDDEN:2 * HIDDEN],
                                    wi[:, 2 * HIDDEN:], bi[2 * HIDDEN:],
                                    SCALE, MHA_ROWS, _mha_row)
    vals["Wstk_mha"], vals["biasx_mha"] = w_stk, bias_x
    vals["Wo_mha"] = raw["mha_out_w"]
    vals["bo_mha"] = raw["mha_out_b"].reshape(1, HIDDEN)

    slab = np.zeros((_SLAB_ROWS, SLAB_WIDTH), np.float32)
    for name, (off, r, c) in _OFFS.items():
        a = np.asarray(vals[name], np.float32)
        assert a.shape == (r, c), (name, a.shape, (r, c))
        slab[off:off + r, :c] = a
    return jnp.asarray(slab)


# ----------------------------- wrapper ----------------------------------------
def _extract_patches(x):
    B, C, Hi, Wi = x.shape
    Hp, Wp = Hi // PATCH, Wi // PATCH
    p = x.reshape(B, C, Hp, PATCH, Wp, PATCH).transpose(0, 2, 4, 1, 3, 5)
    return p.reshape(B * Hp * Wp, C * PATCH * PATCH)


def vit_anomaly_forward(slab, x):
    # Conv patch-embedding relayout (kernel=stride=PATCH) done once outside the kernel.
    patches = _extract_patches(x)                               # (B*NP, PATCH_DIM)
    flat = pl.pallas_call(
        _fused_vit_anomaly_kernel,
        out_shape=jax.ShapeDtypeStruct((BATCH * SEQ, HIDDEN), jnp.float32),
        in_specs=[pl.BlockSpec(memory_space=pltpu.MemorySpace.VMEM),
                  pl.BlockSpec(memory_space=pltpu.MemorySpace.VMEM)],
        out_specs=pl.BlockSpec(memory_space=pltpu.MemorySpace.VMEM),
        cost_estimate=pl.CostEstimate(
            flops=3_300_000,
            transcendentals=9_000,
            bytes_accessed=int(4 * (_SLAB_ROWS * SLAB_WIDTH
                                    + BATCH * NUM_PATCHES * PATCH_DIM
                                    + BATCH * SEQ * HIDDEN)),
        ),
    )(patches, slab)
    # (L, N, E) of the trailing MHA == (image batch, tokens, hidden), as PyTorch returns.
    return flat.reshape(BATCH, SEQ, HIDDEN)


# ----------------------------- pure-JAX/numpy reference ------------------------
def reference_forward(raw, x):
    patches = np.asarray(_extract_patches(np.asarray(x, np.float32)))
    emb = patches @ raw["patch_w"] + raw["patch_b"]
    toks = np.zeros((BATCH, SEQ, HIDDEN), np.float32)
    for b in range(BATCH):
        toks[b, 0] = raw["cls"]
        toks[b, 1:] = emb[b * NUM_PATCHES:(b + 1) * NUM_PATCHES]
    toks = toks + raw["pos"][None]
    h = toks.reshape(BATCH * SEQ, HIDDEN)

    def ln(v, g, b_):
        m = v.mean(-1, keepdims=True)
        d = v - m
        var = (d * d).mean(-1, keepdims=True)
        return d / np.sqrt(var + EPS) * g + b_

    def softmax(s):
        s = s - s.max(-1, keepdims=True)
        e = np.exp(s)
        return e / e.sum(-1, keepdims=True)

    def gelu(v):
        c = 0.7978845608028654
        return 0.5 * v * (1.0 + np.tanh(c * (v + 0.044715 * v ** 3)))

    for L in raw["layers"]:
        hn = ln(h, L["ln1_g"], L["ln1_b"])
        q = hn @ L["wq"] + L["bq"]
        k = hn @ L["wk"] + L["bk"]
        v = hn @ L["wv"] + L["bv"]
        attn = np.zeros_like(h)
        for b in range(BATCH):
            sl = slice(b * SEQ, (b + 1) * SEQ)
            for hh in range(HEADS):
                cs = slice(hh * HEAD_DIM, (hh + 1) * HEAD_DIM)
                s = (q[sl, cs] @ k[sl, cs].T) * SCALE
                attn[sl, cs] = softmax(s) @ v[sl, cs]
        h = h + attn @ L["wo"] + L["bo"]
        hn2 = ln(h, L["ln2_g"], L["ln2_b"])
        h = h + gelu(hn2 @ L["w1"] + L["b1"]) @ L["w2"] + L["b2"]

    lh = ln(h, raw["fln_g"], raw["fln_b"])
    wi, bi = raw["mha_in_w"], raw["mha_in_b"]
    q = lh @ wi[:, 0:HIDDEN] + bi[0:HIDDEN]
    k = lh @ wi[:, HIDDEN:2 * HIDDEN] + bi[HIDDEN:2 * HIDDEN]
    v = lh @ wi[:, 2 * HIDDEN:] + bi[2 * HIDDEN:]
    pre = np.zeros_like(lh)
    for n in range(SEQ):                                  # MHA batch = tokens
        rows = [l * SEQ + n for l in range(BATCH)]        # sequence = the B images
        for hh in range(HEADS):
            cs = slice(hh * HEAD_DIM, (hh + 1) * HEAD_DIM)
            qh = q[rows][:, cs]
            kh = k[rows][:, cs]
            vh = v[rows][:, cs]
            o = softmax((qh @ kh.T) * SCALE) @ vh
            for li, r in enumerate(rows):
                pre[r, cs] = o[li]
    out = pre @ raw["mha_out_w"] + raw["mha_out_b"]
    return out.reshape(BATCH, SEQ, HIDDEN)


# ----------------------------- main -------------------------------------------
if __name__ == "__main__":
    key = jax.random.PRNGKey(0)
    pkey, xkey = jax.random.split(key)
    raw = init_raw_params(pkey)
    slab = pack_params(raw)
    x = jax.random.normal(xkey, (BATCH, CHANNELS, IMG, IMG), dtype=jnp.float32)

    fwd = jax.jit(vit_anomaly_forward)
    out = jax.block_until_ready(fwd(slab, x))

    assert out.shape == (BATCH, SEQ, HIDDEN), out.shape
    assert bool(jnp.all(jnp.isfinite(out)))

    ref = reference_forward(raw, np.asarray(x))
    err = float(np.max(np.abs(np.asarray(out) - ref)))
    assert err < 2e-3, f"max abs diff vs reference = {err}"
    print("KERNEL_OK")
</pallas_src>

<mosaic_0001>
module attributes {stable_mosaic.version = 11 : i64} {
  func.func @_fused_vit_anomaly_kernel(%arg0: memref<8x192xf32, #tpu.memory_space<vmem>>, %arg1: memref<1504x128xf32, #tpu.memory_space<vmem>>, %arg2: memref<10x32xf32, #tpu.memory_space<vmem>>) attributes {dimension_semantics = [], scalar_prefetch = 0 : i64, scratch_operands = 0 : i64, tpu.core_type = #tpu.core_type<tc>} {
    %c224 = arith.constant 224 : index
    %c0 = arith.constant 0 : index
    %0 = vector.load %arg1[%c224, %c0] : memref<1504x128xf32, #tpu.memory_space<vmem>>, vector<32x128xf32>
    %c0_0 = arith.constant 0 : index
    %c0_1 = arith.constant 0 : index
    %1 = vector.load %arg0[%c0_0, %c0_1] : memref<8x192xf32, #tpu.memory_space<vmem>>, vector<8x192xf32>
    %c0_2 = arith.constant 0 : index
    %c0_3 = arith.constant 0 : index
    %2 = vector.load %arg1[%c0_2, %c0_3] : memref<1504x128xf32, #tpu.memory_space<vmem>>, vector<192x32xf32>
    %cst = arith.constant dense<0.000000e+00> : vector<8x32xf32>
    %3 = tpu.matmul %1, %2, %cst {dimension_numbers = #tpu.dot_dimension_numbers<[1], [0], [0], [1], [0, 0, 1, 1], [], []>} : vector<8x192xf32>, vector<192x32xf32>, vector<8x32xf32> -> vector<8x32xf32>
    %c208 = arith.constant 208 : index
    %c0_4 = arith.constant 0 : index
    %4 = vector.load %arg1[%c208, %c0_4] : memref<1504x128xf32, #tpu.memory_space<vmem>>, vector<10x8xf32>
    %cst_5 = arith.constant dense<0.000000e+00> : vector<10x32xf32>
    %5 = tpu.matmul %4, %3, %cst_5 {dimension_numbers = #tpu.dot_dimension_numbers<[1], [0], [0], [1], [0, 0, 1, 1], [], []>} : vector<10x8xf32>, vector<8x32xf32>, vector<10x32xf32> -> vector<10x32xf32>
    %c192 = arith.constant 192 : index
    %c0_6 = arith.constant 0 : index
    %6 = vector.load %arg1[%c192, %c0_6] : memref<1504x128xf32, #tpu.memory_space<vmem>>, vector<10x32xf32>
    %7 = arith.addf %5, %6 : vector<10x32xf32>
    %c256 = arith.constant 256 : index
    %c0_7 = arith.constant 0 : index
    %8 = vector.load %arg1[%c256, %c0_7] : memref<1504x128xf32, #tpu.memory_space<vmem>>, vector<40x10xf32>
    %c296 = arith.constant 296 : index
    %c0_8 = arith.constant 0 : index
    %9 = vector.load %arg1[%c296, %c0_8] : memref<1504x128xf32, #tpu.memory_space<vmem>>, vector<10x40xf32>
    %c312 = arith.constant 312 : index
    %c0_9 = arith.constant 0 : index
    %10 = vector.load %arg1[%c312, %c0_9] : memref<1504x128xf32, #tpu.memory_space<vmem>>, vector<40x128xf32>
    %c352 = arith.constant 352 : index
    %c0_10 = arith.constant 0 : index
    %11 = vector.load %arg1[%c352, %c0_10] : memref<1504x128xf32, #tpu.memory_space<vmem>>, vector<40x40xf32>
    %cst_11 = arith.constant dense<0.000000e+00> : vector<10xf32>
    %12 = vector.multi_reduction <add>, %7, %cst_11 [1] : vector<10x32xf32> to vector<10xf32>
    %13 = vector.shape_cast %12 : vector<10xf32> to vector<10x1xf32>
    %cst_12 = arith.constant 3.200000e+01 : f32
    %14 = vector.broadcast %cst_12 : f32 to vector<10x1xf32>
    %15 = arith.divf %13, %14 : vector<10x1xf32>
    %16 = vector.broadcast %15 : vector<10x1xf32> to vector<10x32xf32>
    %17 = arith.subf %7, %16 : vector<10x32xf32>
    %18 = arith.mulf %17, %17 : vector<10x32xf32>
    %cst_13 = arith.constant dense<0.000000e+00> : vector<10xf32>
    %19 = vector.multi_reduction <add>, %18, %cst_13 [1] : vector<10x32xf32> to vector<10xf32>
    %20 = vector.shape_cast %19 : vector<10xf32> to vector<10x1xf32>
    %cst_14 = arith.constant 3.200000e+01 : f32
    %21 = vector.broadcast %cst_14 : f32 to vector<10x1xf32>
    %22 = arith.divf %20, %21 : vector<10x1xf32>
    %cst_15 = arith.constant 9.99999996E-13 : f32
    %23 = vector.broadcast %cst_15 : f32 to vector<10x1xf32>
    %24 = arith.addf %22, %23 : vector<10x1xf32>
    %25 = math.rsqrt %24 : vector<10x1xf32>
    %26 = vector.broadcast %25 : vector<10x1xf32> to vector<10x32xf32>
    %27 = arith.mulf %17, %26 : vector<10x32xf32>
    %c528 = arith.constant 528 : index
    %c0_16 = arith.constant 0 : index
    %28 = vector.load %arg1[%c528, %c0_16] : memref<1504x128xf32, #tpu.memory_space<vmem>>, vector<128x48xf32>
    %c656 = arith.constant 656 : index
    %c0_17 = arith.constant 0 : index
    %29 = vector.load %arg1[%c656, %c0_17] : memref<1504x128xf32, #tpu.memory_space<vmem>>, vector<40x48xf32>
    %c696 = arith.constant 696 : index
    %c0_18 = arith.constant 0 : index
    %30 = vector.load %arg1[%c696, %c0_18] : memref<1504x128xf32, #tpu.memory_space<vmem>>, vector<32x32xf32>
    %c728 = arith.constant 728 : index
    %c0_19 = arith.constant 0 : index
    %31 = vector.load %arg1[%c728, %c0_19] : memref<1504x128xf32, #tpu.memory_space<vmem>>, vector<1x32xf32>
    %cst_20 = arith.constant dense<0.000000e+00> : vector<10x128xf32>
    %32 = tpu.matmul %27, %0, %cst_20 {dimension_numbers = #tpu.dot_dimension_numbers<[1], [0], [0], [1], [0, 0, 1, 1], [], []>} : vector<10x32xf32>, vector<32x128xf32>, vector<10x128xf32> -> vector<10x128xf32>
    %cst_21 = arith.constant dense<0.000000e+00> : vector<40x128xf32>
    %33 = tpu.matmul %8, %32, %cst_21 {dimension_numbers = #tpu.dot_dimension_numbers<[1], [0], [0], [1], [0, 0, 1, 1], [], []>} : vector<40x10xf32>, vector<10x128xf32>, vector<40x128xf32> -> vector<40x128xf32>
    %34 = arith.mulf %33, %10 : vector<40x128xf32>
    %cst_22 = arith.constant dense<0.000000e+00> : vector<40x48xf32>
    %35 = tpu.matmul %34, %28, %cst_22 {dimension_numbers = #tpu.dot_dimension_numbers<[1], [0], [0], [1], [0, 0, 1, 1], [], []>} : vector<40x128xf32>, vector<128x48xf32>, vector<40x48xf32> -> vector<40x48xf32>
    %36 = arith.addf %35, %29 : vector<40x48xf32>
    %37 = vector.extract_strided_slice %36 {offsets = [0, 0], sizes = [40, 8], strides = [1, 1]} : vector<40x48xf32> to vector<40x8xf32>
    %38 = vector.extract_strided_slice %36 {offsets = [0, 8], sizes = [40, 8], strides = [1, 1]} : vector<40x48xf32> to vector<40x8xf32>
    %39 = vector.extract_strided_slice %36 {offsets = [0, 16], sizes = [40, 32], strides = [1, 1]} : vector<40x48xf32> to vector<40x32xf32>
    %cst_23 = arith.constant dense<0.000000e+00> : vector<40x40xf32>
    %40 = tpu.matmul %37, %38, %cst_23 {dimension_numbers = #tpu.dot_dimension_numbers<[1], [1], [0], [0], [0, 0, 1, 0], [], []>} : vector<40x8xf32>, vector<40x8xf32>, vector<40x40xf32> -> vector<40x40xf32>
    %41 = arith.addf %40, %11 : vector<40x40xf32>
    %cst_24 = arith.constant dense<0xFF800000> : vector<40xf32>
    %42 = vector.multi_reduction <maximumf>, %41, %cst_24 [1] : vector<40x40xf32> to vector<40xf32>
    %43 = vector.shape_cast %42 : vector<40xf32> to vector<40x1xf32>
    %44 = vector.broadcast %43 : vector<40x1xf32> to vector<40x40xf32>
    %45 = arith.subf %41, %44 : vector<40x40xf32>
    %46 = math.exp %45 : vector<40x40xf32>
    %cst_25 = arith.constant dense<0.000000e+00> : vector<40xf32>
    %47 = vector.multi_reduction <add>, %46, %cst_25 [1] : vector<40x40xf32> to vector<40xf32>
    %48 = vector.shape_cast %47 : vector<40xf32> to vector<40x1xf32>
    %49 = tpu.reciprocal %48 : vector<40x1xf32> -> vector<40x1xf32>
    %50 = vector.broadcast %49 : vector<40x1xf32> to vector<40x40xf32>
    %51 = arith.mulf %46, %50 : vector<40x40xf32>
    %cst_26 = arith.constant dense<0.000000e+00> : vector<40x32xf32>
    %52 = tpu.matmul %51, %39, %cst_26 {dimension_numbers = #tpu.dot_dimension_numbers<[1], [0], [0], [1], [0, 0, 1, 1], [], []>} : vector<40x40xf32>, vector<40x32xf32>, vector<40x32xf32> -> vector<40x32xf32>
    %cst_27 = arith.constant dense<0.000000e+00> : vector<10x32xf32>
    %53 = tpu.matmul %9, %52, %cst_27 {dimension_numbers = #tpu.dot_dimension_numbers<[1], [0], [0], [1], [0, 0, 1, 1], [], []>} : vector<10x40xf32>, vector<40x32xf32>, vector<10x32xf32> -> vector<10x32xf32>
    %cst_28 = arith.constant dense<0.000000e+00> : vector<10x32xf32>
    %54 = tpu.matmul %53, %30, %cst_28 {dimension_numbers = #tpu.dot_dimension_numbers<[1], [0], [0], [1], [0, 0, 1, 1], [], []>} : vector<10x32xf32>, vector<32x32xf32>, vector<10x32xf32> -> vector<10x32xf32>
    %55 = vector.broadcast %31 : vector<1x32xf32> to vector<10x32xf32>
    %56 = arith.addf %54, %55 : vector<10x32xf32>
    %57 = arith.addf %7, %56 : vector<10x32xf32>
    %cst_29 = arith.constant dense<0.000000e+00> : vector<10xf32>
    %58 = vector.multi_reduction <add>, %57, %cst_29 [1] : vector<10x32xf32> to vector<10xf32>
    %59 = vector.shape_cast %58 : vector<10xf32> to vector<10x1xf32>
    %cst_30 = arith.constant 3.200000e+01 : f32
    %60 = vector.broadcast %cst_30 : f32 to vector<10x1xf32>
    %61 = arith.divf %59, %60 : vector<10x1xf32>
    %62 = vector.broadcast %61 : vector<10x1xf32> to vector<10x32xf32>
    %63 = arith.subf %57, %62 : vector<10x32xf32>
    %64 = arith.mulf %63, %63 : vector<10x32xf32>
    %cst_31 = arith.constant dense<0.000000e+00> : vector<10xf32>
    %65 = vector.multi_reduction <add>, %64, %cst_31 [1] : vector<10x32xf32> to vector<10xf32>
    %66 = vector.shape_cast %65 : vector<10xf32> to vector<10x1xf32>
    %cst_32 = arith.constant 3.200000e+01 : f32
    %67 = vector.broadcast %cst_32 : f32 to vector<10x1xf32>
    %68 = arith.divf %66, %67 : vector<10x1xf32>
    %cst_33 = arith.constant 9.99999996E-13 : f32
    %69 = vector.broadcast %cst_33 : f32 to vector<10x1xf32>
    %70 = arith.addf %68, %69 : vector<10x1xf32>
    %71 = math.rsqrt %70 : vector<10x1xf32>
    %72 = vector.broadcast %71 : vector<10x1xf32> to vector<10x32xf32>
    %73 = arith.mulf %63, %72 : vector<10x32xf32>
    %c736 = arith.constant 736 : index
    %c0_34 = arith.constant 0 : index
    %74 = vector.load %arg1[%c736, %c0_34] : memref<1504x128xf32, #tpu.memory_space<vmem>>, vector<32x128xf32>
    %cst_35 = arith.constant dense<0.000000e+00> : vector<10x128xf32>
    %75 = tpu.matmul %73, %74, %cst_35 {dimension_numbers = #tpu.dot_dimension_numbers<[1], [0], [0], [1], [0, 0, 1, 1], [], []>} : vector<10x32xf32>, vector<32x128xf32>, vector<10x128xf32> -> vector<10x128xf32>
    %c768 = arith.constant 768 : index
    %c0_36 = arith.constant 0 : index
    %76 = vector.load %arg1[%c768, %c0_36] : memref<1504x128xf32, #tpu.memory_space<vmem>>, vector<1x128xf32>
    %77 = vector.broadcast %76 : vector<1x128xf32> to vector<10x128xf32>
    %78 = arith.addf %75, %77 : vector<10x128xf32>
    %cst_37 = arith.constant 5.000000e-01 : f32
    %79 = vector.broadcast %cst_37 : f32 to vector<10x128xf32>
    %80 = arith.mulf %79, %78 : vector<10x128xf32>
    %cst_38 = arith.constant 4.471500e-02 : f32
    %81 = vector.broadcast %cst_38 : f32 to vector<10x128xf32>
    %82 = arith.mulf %81, %78 : vector<10x128xf32>
    %83 = arith.mulf %82, %78 : vector<10x128xf32>
    %84 = arith.mulf %83, %78 : vector<10x128xf32>
    %85 = arith.addf %78, %84 : vector<10x128xf32>
    %cst_39 = arith.constant 0.797884583 : f32
    %86 = vector.broadcast %cst_39 : f32 to vector<10x128xf32>
    %87 = arith.mulf %86, %85 : vector<10x128xf32>
    %88 = math.tanh %87 : vector<10x128xf32>
    %cst_40 = arith.constant 1.000000e+00 : f32
    %89 = vector.broadcast %cst_40 : f32 to vector<10x128xf32>
    %90 = arith.addf %89, %88 : vector<10x128xf32>
    %91 = arith.mulf %80, %90 : vector<10x128xf32>
    %c776 = arith.constant 776 : index
    %c0_41 = arith.constant 0 : index
    %92 = vector.load %arg1[%c776, %c0_41] : memref<1504x128xf32, #tpu.memory_space<vmem>>, vector<128x32xf32>
    %cst_42 = arith.constant dense<0.000000e+00> : vector<10x32xf32>
    %93 = tpu.matmul %91, %92, %cst_42 {dimension_numbers = #tpu.dot_dimension_numbers<[1], [0], [0], [1], [0, 0, 1, 1], [], []>} : vector<10x128xf32>, vector<128x32xf32>, vector<10x32xf32> -> vector<10x32xf32>
    %94 = arith.addf %57, %93 : vector<10x32xf32>
    %c904 = arith.constant 904 : index
    %c0_43 = arith.constant 0 : index
    %95 = vector.load %arg1[%c904, %c0_43] : memref<1504x128xf32, #tpu.memory_space<vmem>>, vector<1x32xf32>
    %96 = vector.broadcast %95 : vector<1x32xf32> to vector<10x32xf32>
    %97 = arith.addf %94, %96 : vector<10x32xf32>
    %cst_44 = arith.constant dense<0.000000e+00> : vector<10xf32>
    %98 = vector.multi_reduction <add>, %97, %cst_44 [1] : vector<10x32xf32> to vector<10xf32>
    %99 = vector.shape_cast %98 : vector<10xf32> to vector<10x1xf32>
    %cst_45 = arith.constant 3.200000e+01 : f32
    %100 = vector.broadcast %cst_45 : f32 to vector<10x1xf32>
    %101 = arith.divf %99, %100 : vector<10x1xf32>
    %102 = vector.broadcast %101 : vector<10x1xf32> to vector<10x32xf32>
    %103 = arith.subf %97, %102 : vector<10x32xf32>
    %104 = arith.mulf %103, %103 : vector<10x32xf32>
    %cst_46 = arith.constant dense<0.000000e+00> : vector<10xf32>
    %105 = vector.multi_reduction <add>, %104, %cst_46 [1] : vector<10x32xf32> to vector<10xf32>
    %106 = vector.shape_cast %105 : vector<10xf32> to vector<10x1xf32>
    %cst_47 = arith.constant 3.200000e+01 : f32
    %107 = vector.broadcast %cst_47 : f32 to vector<10x1xf32>
    %108 = arith.divf %106, %107 : vector<10x1xf32>
    %cst_48 = arith.constant 9.99999996E-13 : f32
    %109 = vector.broadcast %cst_48 : f32 to vector<10x1xf32>
    %110 = arith.addf %108, %109 : vector<10x1xf32>
    %111 = math.rsqrt %110 : vector<10x1xf32>
    %112 = vector.broadcast %111 : vector<10x1xf32> to vector<10x32xf32>
    %113 = arith.mulf %103, %112 : vector<10x32xf32>
    %c912 = arith.constant 912 : index
    %c0_49 = arith.constant 0 : index
    %114 = vector.load %arg1[%c912, %c0_49] : memref<1504x128xf32, #tpu.memory_space<vmem>>, vector<128x48xf32>
    %c1040 = arith.constant 1040 : index
    %c0_50 = arith.constant 0 : index
    %115 = vector.load %arg1[%c1040, %c0_50] : memref<1504x128xf32, #tpu.memory_space<vmem>>, vector<40x48xf32>
    %c1080 = arith.constant 1080 : index
    %c0_51 = arith.constant 0 : index
    %116 = vector.load %arg1[%c1080, %c0_51] : memref<1504x128xf32, #tpu.memory_space<vmem>>, vector<32x32xf32>
    %c1112 = arith.constant 1112 : index
    %c0_52 = arith.constant 0 : index
    %117 = vector.load %arg1[%c1112, %c0_52] : memref<1504x128xf32, #tpu.memory_space<vmem>>, vector<1x32xf32>
    %cst_53 = arith.constant dense<0.000000e+00> : vector<10x128xf32>
    %118 = tpu.matmul %113, %0, %cst_53 {dimension_numbers = #tpu.dot_dimension_numbers<[1], [0], [0], [1], [0, 0, 1, 1], [], []>} : vector<10x32xf32>, vector<32x128xf32>, vector<10x128xf32> -> vector<10x128xf32>
    %cst_54 = arith.constant dense<0.000000e+00> : vector<40x128xf32>
    %119 = tpu.matmul %8, %118, %cst_54 {dimension_numbers = #tpu.dot_dimension_numbers<[1], [0], [0], [1], [0, 0, 1, 1], [], []>} : vector<40x10xf32>, vector<10x128xf32>, vector<40x128xf32> -> vector<40x128xf32>
    %120 = arith.mulf %119, %10 : vector<40x128xf32>
    %cst_55 = arith.constant dense<0.000000e+00> : vector<40x48xf32>
    %121 = tpu.matmul %120, %114, %cst_55 {dimension_numbers = #tpu.dot_dimension_numbers<[1], [0], [0], [1], [0, 0, 1, 1], [], []>} : vector<40x128xf32>, vector<128x48xf32>, vector<40x48xf32> -> vector<40x48xf32>
    %122 = arith.addf %121, %115 : vector<40x48xf32>
    %123 = vector.extract_strided_slice %122 {offsets = [0, 0], sizes = [40, 8], strides = [1, 1]} : vector<40x48xf32> to vector<40x8xf32>
    %124 = vector.extract_strided_slice %122 {offsets = [0, 8], sizes = [40, 8], strides = [1, 1]} : vector<40x48xf32> to vector<40x8xf32>
    %125 = vector.extract_strided_slice %122 {offsets = [0, 16], sizes = [40, 32], strides = [1, 1]} : vector<40x48xf32> to vector<40x32xf32>
    %cst_56 = arith.constant dense<0.000000e+00> : vector<40x40xf32>
    %126 = tpu.matmul %123, %124, %cst_56 {dimension_numbers = #tpu.dot_dimension_numbers<[1], [1], [0], [0], [0, 0, 1, 0], [], []>} : vector<40x8xf32>, vector<40x8xf32>, vector<40x40xf32> -> vector<40x40xf32>
    %127 = arith.addf %126, %11 : vector<40x40xf32>
    %cst_57 = arith.constant dense<0xFF800000> : vector<40xf32>
    %128 = vector.multi_reduction <maximumf>, %127, %cst_57 [1] : vector<40x40xf32> to vector<40xf32>
    %129 = vector.shape_cast %128 : vector<40xf32> to vector<40x1xf32>
    %130 = vector.broadcast %129 : vector<40x1xf32> to vector<40x40xf32>
    %131 = arith.subf %127, %130 : vector<40x40xf32>
    %132 = math.exp %131 : vector<40x40xf32>
    %cst_58 = arith.constant dense<0.000000e+00> : vector<40xf32>
    %133 = vector.multi_reduction <add>, %132, %cst_58 [1] : vector<40x40xf32> to vector<40xf32>
    %134 = vector.shape_cast %133 : vector<40xf32> to vector<40x1xf32>
    %135 = tpu.reciprocal %134 : vector<40x1xf32> -> vector<40x1xf32>
    %136 = vector.broadcast %135 : vector<40x1xf32> to vector<40x40xf32>
    %137 = arith.mulf %132, %136 : vector<40x40xf32>
    %cst_59 = arith.constant dense<0.000000e+00> : vector<40x32xf32>
    %138 = tpu.matmul %137, %125, %cst_59 {dimension_numbers = #tpu.dot_dimension_numbers<[1], [0], [0], [1], [0, 0, 1, 1], [], []>} : vector<40x40xf32>, vector<40x32xf32>, vector<40x32xf32> -> vector<40x32xf32>
    %cst_60 = arith.constant dense<0.000000e+00> : vector<10x32xf32>
    %139 = tpu.matmul %9, %138, %cst_60 {dimension_numbers = #tpu.dot_dimension_numbers<[1], [0], [0], [1], [0, 0, 1, 1], [], []>} : vector<10x40xf32>, vector<40x32xf32>, vector<10x32xf32> -> vector<10x32xf32>
    %cst_61 = arith.constant dense<0.000000e+00> : vector<10x32xf32>
    %140 = tpu.matmul %139, %116, %cst_61 {dimension_numbers = #tpu.dot_dimension_numbers<[1], [0], [0], [1], [0, 0, 1, 1], [], []>} : vector<10x32xf32>, vector<32x32xf32>, vector<10x32xf32> -> vector<10x32xf32>
    %141 = vector.broadcast %117 : vector<1x32xf32> to vector<10x32xf32>
    %142 = arith.addf %140, %141 : vector<10x32xf32>
    %143 = arith.addf %97, %142 : vector<10x32xf32>
    %cst_62 = arith.constant dense<0.000000e+00> : vector<10xf32>
    %144 = vector.multi_reduction <add>, %143, %cst_62 [1] : vector<10x32xf32> to vector<10xf32>
    %145 = vector.shape_cast %144 : vector<10xf32> to vector<10x1xf32>
    %cst_63 = arith.constant 3.200000e+01 : f32
    %146 = vector.broadcast %cst_63 : f32 to vector<10x1xf32>
    %147 = arith.divf %145, %146 : vector<10x1xf32>
    %148 = vector.broadcast %147 : vector<10x1xf32> to vector<10x32xf32>
    %149 = arith.subf %143, %148 : vector<10x32xf32>
    %150 = arith.mulf %149, %149 : vector<10x32xf32>
    %cst_64 = arith.constant dense<0.000000e+00> : vector<10xf32>
    %151 = vector.multi_reduction <add>, %150, %cst_64 [1] : vector<10x32xf32> to vector<10xf32>
    %152 = vector.shape_cast %151 : vector<10xf32> to vector<10x1xf32>
    %cst_65 = arith.constant 3.200000e+01 : f32
    %153 = vector.broadcast %cst_65 : f32 to vector<10x1xf32>
    %154 = arith.divf %152, %153 : vector<10x1xf32>
    %cst_66 = arith.constant 9.99999996E-13 : f32
    %155 = vector.broadcast %cst_66 : f32 to vector<10x1xf32>
    %156 = arith.addf %154, %155 : vector<10x1xf32>
    %157 = math.rsqrt %156 : vector<10x1xf32>
    %158 = vector.broadcast %157 : vector<10x1xf32> to vector<10x32xf32>
    %159 = arith.mulf %149, %158 : vector<10x32xf32>
    %c1120 = arith.constant 1120 : index
    %c0_67 = arith.constant 0 : index
    %160 = vector.load %arg1[%c1120, %c0_67] : memref<1504x128xf32, #tpu.memory_space<vmem>>, vector<32x128xf32>
    %cst_68 = arith.constant dense<0.000000e+00> : vector<10x128xf32>
    %161 = tpu.matmul %159, %160, %cst_68 {dimension_numbers = #tpu.dot_dimension_numbers<[1], [0], [0], [1], [0, 0, 1, 1], [], []>} : vector<10x32xf32>, vector<32x128xf32>, vector<10x128xf32> -> vector<10x128xf32>
    %c1152 = arith.constant 1152 : index
    %c0_69 = arith.constant 0 : index
    %162 = vector.load %arg1[%c1152, %c0_69] : memref<1504x128xf32, #tpu.memory_space<vmem>>, vector<1x128xf32>
    %163 = vector.broadcast %162 : vector<1x128xf32> to vector<10x128xf32>
    %164 = arith.addf %161, %163 : vector<10x128xf32>
    %cst_70 = arith.constant 5.000000e-01 : f32
    %165 = vector.broadcast %cst_70 : f32 to vector<10x128xf32>
    %166 = arith.mulf %165, %164 : vector<10x128xf32>
    %cst_71 = arith.constant 4.471500e-02 : f32
    %167 = vector.broadcast %cst_71 : f32 to vector<10x128xf32>
    %168 = arith.mulf %167, %164 : vector<10x128xf32>
    %169 = arith.mulf %168, %164 : vector<10x128xf32>
    %170 = arith.mulf %169, %164 : vector<10x128xf32>
    %171 = arith.addf %164, %170 : vector<10x128xf32>
    %cst_72 = arith.constant 0.797884583 : f32
    %172 = vector.broadcast %cst_72 : f32 to vector<10x128xf32>
    %173 = arith.mulf %172, %171 : vector<10x128xf32>
    %174 = math.tanh %173 : vector<10x128xf32>
    %cst_73 = arith.constant 1.000000e+00 : f32
    %175 = vector.broadcast %cst_73 : f32 to vector<10x128xf32>
    %176 = arith.addf %175, %174 : vector<10x128xf32>
    %177 = arith.mulf %166, %176 : vector<10x128xf32>
    %c1160 = arith.constant 1160 : index
    %c0_74 = arith.constant 0 : index
    %178 = vector.load %arg1[%c1160, %c0_74] : memref<1504x128xf32, #tpu.memory_space<vmem>>, vector<128x32xf32>
    %cst_75 = arith.constant dense<0.000000e+00> : vector<10x32xf32>
    %179 = tpu.matmul %177, %178, %cst_75 {dimension_numbers = #tpu.dot_dimension_numbers<[1], [0], [0], [1], [0, 0, 1, 1], [], []>} : vector<10x128xf32>, vector<128x32xf32>, vector<10x32xf32> -> vector<10x32xf32>
    %180 = arith.addf %143, %179 : vector<10x32xf32>
    %c1288 = arith.constant 1288 : index
    %c0_76 = arith.constant 0 : index
    %181 = vector.load %arg1[%c1288, %c0_76] : memref<1504x128xf32, #tpu.memory_space<vmem>>, vector<1x32xf32>
    %182 = vector.broadcast %181 : vector<1x32xf32> to vector<10x32xf32>
    %183 = arith.addf %180, %182 : vector<10x32xf32>
    %cst_77 = arith.constant dense<0.000000e+00> : vector<10xf32>
    %184 = vector.multi_reduction <add>, %183, %cst_77 [1] : vector<10x32xf32> to vector<10xf32>
    %185 = vector.shape_cast %184 : vector<10xf32> to vector<10x1xf32>
    %cst_78 = arith.constant 3.200000e+01 : f32
    %186 = vector.broadcast %cst_78 : f32 to vector<10x1xf32>
    %187 = arith.divf %185, %186 : vector<10x1xf32>
    %188 = vector.broadcast %187 : vector<10x1xf32> to vector<10x32xf32>
    %189 = arith.subf %183, %188 : vector<10x32xf32>
    %190 = arith.mulf %189, %189 : vector<10x32xf32>
    %cst_79 = arith.constant dense<0.000000e+00> : vector<10xf32>
    %191 = vector.multi_reduction <add>, %190, %cst_79 [1] : vector<10x32xf32> to vector<10xf32>
    %192 = vector.shape_cast %191 : vector<10xf32> to vector<10x1xf32>
    %cst_80 = arith.constant 3.200000e+01 : f32
    %193 = vector.broadcast %cst_80 : f32 to vector<10x1xf32>
    %194 = arith.divf %192, %193 : vector<10x1xf32>
    %cst_81 = arith.constant 9.99999996E-13 : f32
    %195 = vector.broadcast %cst_81 : f32 to vector<10x1xf32>
    %196 = arith.addf %194, %195 : vector<10x1xf32>
    %197 = math.rsqrt %196 : vector<10x1xf32>
    %198 = vector.broadcast %197 : vector<10x1xf32> to vector<10x32xf32>
    %199 = arith.mulf %189, %198 : vector<10x32xf32>
    %c392 = arith.constant 392 : index
    %c0_82 = arith.constant 0 : index
    %200 = vector.load %arg1[%c392, %c0_82] : memref<1504x128xf32, #tpu.memory_space<vmem>>, vector<40x10xf32>
    %c432 = arith.constant 432 : index
    %c0_83 = arith.constant 0 : index
    %201 = vector.load %arg1[%c432, %c0_83] : memref<1504x128xf32, #tpu.memory_space<vmem>>, vector<10x40xf32>
    %c448 = arith.constant 448 : index
    %c0_84 = arith.constant 0 : index
    %202 = vector.load %arg1[%c448, %c0_84] : memref<1504x128xf32, #tpu.memory_space<vmem>>, vector<40x128xf32>
    %c488 = arith.constant 488 : index
    %c0_85 = arith.constant 0 : index
    %203 = vector.load %arg1[%c488, %c0_85] : memref<1504x128xf32, #tpu.memory_space<vmem>>, vector<40x40xf32>
    %c1296 = arith.constant 1296 : index
    %c0_86 = arith.constant 0 : index
    %204 = vector.load %arg1[%c1296, %c0_86] : memref<1504x128xf32, #tpu.memory_space<vmem>>, vector<128x48xf32>
    %c1424 = arith.constant 1424 : index
    %c0_87 = arith.constant 0 : index
    %205 = vector.load %arg1[%c1424, %c0_87] : memref<1504x128xf32, #tpu.memory_space<vmem>>, vector<40x48xf32>
    %c1464 = arith.constant 1464 : index
    %c0_88 = arith.constant 0 : index
    %206 = vector.load %arg1[%c1464, %c0_88] : memref<1504x128xf32, #tpu.memory_space<vmem>>, vector<32x32xf32>
    %c1496 = arith.constant 1496 : index
    %c0_89 = arith.constant 0 : index
    %207 = vector.load %arg1[%c1496, %c0_89] : memref<1504x128xf32, #tpu.memory_space<vmem>>, vector<1x32xf32>
    %cst_90 = arith.constant dense<0.000000e+00> : vector<10x128xf32>
    %208 = tpu.matmul %199, %0, %cst_90 {dimension_numbers = #tpu.dot_dimension_numbers<[1], [0], [0], [1], [0, 0, 1, 1], [], []>} : vector<10x32xf32>, vector<32x128xf32>, vector<10x128xf32> -> vector<10x128xf32>
    %cst_91 = arith.constant dense<0.000000e+00> : vector<40x128xf32>
    %209 = tpu.matmul %200, %208, %cst_91 {dimension_numbers = #tpu.dot_dimension_numbers<[1], [0], [0], [1], [0, 0, 1, 1], [], []>} : vector<40x10xf32>, vector<10x128xf32>, vector<40x128xf32> -> vector<40x128xf32>
    %210 = arith.mulf %209, %202 : vector<40x128xf32>
    %cst_92 = arith.constant dense<0.000000e+00> : vector<40x48xf32>
    %211 = tpu.matmul %210, %204, %cst_92 {dimension_numbers = #tpu.dot_dimension_numbers<[1], [0], [0], [1], [0, 0, 1, 1], [], []>} : vector<40x128xf32>, vector<128x48xf32>, vector<40x48xf32> -> vector<40x48xf32>
    %212 = arith.addf %211, %205 : vector<40x48xf32>
    %213 = vector.extract_strided_slice %212 {offsets = [0, 0], sizes = [40, 8], strides = [1, 1]} : vector<40x48xf32> to vector<40x8xf32>
    %214 = vector.extract_strided_slice %212 {offsets = [0, 8], sizes = [40, 8], strides = [1, 1]} : vector<40x48xf32> to vector<40x8xf32>
    %215 = vector.extract_strided_slice %212 {offsets = [0, 16], sizes = [40, 32], strides = [1, 1]} : vector<40x48xf32> to vector<40x32xf32>
    %cst_93 = arith.constant dense<0.000000e+00> : vector<40x40xf32>
    %216 = tpu.matmul %213, %214, %cst_93 {dimension_numbers = #tpu.dot_dimension_numbers<[1], [1], [0], [0], [0, 0, 1, 0], [], []>} : vector<40x8xf32>, vector<40x8xf32>, vector<40x40xf32> -> vector<40x40xf32>
    %217 = arith.addf %216, %203 : vector<40x40xf32>
    %cst_94 = arith.constant dense<0xFF800000> : vector<40xf32>
    %218 = vector.multi_reduction <maximumf>, %217, %cst_94 [1] : vector<40x40xf32> to vector<40xf32>
    %219 = vector.shape_cast %218 : vector<40xf32> to vector<40x1xf32>
    %220 = vector.broadcast %219 : vector<40x1xf32> to vector<40x40xf32>
    %221 = arith.subf %217, %220 : vector<40x40xf32>
    %222 = math.exp %221 : vector<40x40xf32>
    %cst_95 = arith.constant dense<0.000000e+00> : vector<40xf32>
    %223 = vector.multi_reduction <add>, %222, %cst_95 [1] : vector<40x40xf32> to vector<40xf32>
    %224 = vector.shape_cast %223 : vector<40xf32> to vector<40x1xf32>
    %225 = tpu.reciprocal %224 : vector<40x1xf32> -> vector<40x1xf32>
    %226 = vector.broadcast %225 : vector<40x1xf32> to vector<40x40xf32>
    %227 = arith.mulf %222, %226 : vector<40x40xf32>
    %cst_96 = arith.constant dense<0.000000e+00> : vector<40x32xf32>
    %228 = tpu.matmul %227, %215, %cst_96 {dimension_numbers = #tpu.dot_dimension_numbers<[1], [0], [0], [1], [0, 0, 1, 1], [], []>} : vector<40x40xf32>, vector<40x32xf32>, vector<40x32xf32> -> vector<40x32xf32>
    %cst_97 = arith.constant dense<0.000000e+00> : vector<10x32xf32>
    %229 = tpu.matmul %201, %228, %cst_97 {dimension_numbers = #tpu.dot_dimension_numbers<[1], [0], [0], [1], [0, 0, 1, 1], [], []>} : vector<10x40xf32>, vector<40x32xf32>, vector<10x32xf32> -> vector<10x32xf32>
    %cst_98 = arith.constant dense<0.000000e+00> : vector<10x32xf32>
    %230 = tpu.matmul %229, %206, %cst_98 {dimension_numbers = #tpu.dot_dimension_numbers<[1], [0], [0], [1], [0, 0, 1, 1], [], []>} : vector<10x32xf32>, vector<32x32xf32>, vector<10x32xf32> -> vector<10x32xf32>
    %231 = vector.broadcast %207 : vector<1x32xf32> to vector<10x32xf32>
    %232 = arith.addf %230, %231 : vector<10x32xf32>
    %c0_99 = arith.constant 0 : index
    %c0_100 = arith.constant 0 : index
    %233 = vector.load %arg2[%c0_99, %c0_100] : memref<10x32xf32, #tpu.memory_space<vmem>>, vector<10x32xf32>
    tpu.vector_store %arg2[%c0_99, %c0_100], %232 {strides = array<i32>} : memref<10x32xf32, #tpu.memory_space<vmem>>, vector<10x32xf32>,
    return
  }
}

</mosaic_0001>

<bundles_post_ra>
// kernel: vit_anomaly_forward.1
= control target key start
LH: loop header
LB: loop body
LE: loop exit
PB: predicated region body
PF: predicated region fallthrough
CT: control target
= control target key end

     0   :  { %7 = vsyncpa [#allocation3], 0  ;;  %s4511_s9 = smov [#allocation2]   ;;  %s5069_s0 = inlined_call_operand.vmem [shape: f32[8,192], index: 0, kind: input, shape index: {}]   ;;  %s5070_s1 = inlined_call_operand.hbm [shape: f32[1504,128], index: 1, kind: input, shape index: {}]   ;;  %s5071_s2 = inlined_call_operand.vmem [shape: f32[10,32], index: 2, kind: output, shape index: {}]  }
   0x1   :  { %s15_s10 = sshll.u32 %s4511_s9, 4  ;;  %s4487_s13 = scalar_lea.hbm %s5070_s1, 24064  ;;  %s16_s10 = int_to_ptr.vmem [resolvable:$true] %s15_s10 }
   0x2   :  { %p4488_p0 = scmp.ne.s32.totalorder %s5070_s1, %s4487_s13  ;;  %p4491_p1 = scmp.lt.u32.totalorder %s4487_s13, %s5070_s1 }
   0x4   :  { %p4493_p2 = pnand %p4491_p1, %p4488_p0 }
   0x6   :  { %4496 = shalt.err (!%p4493_p2)
}
   0x7   :  { %s4497_s18 = scalar_lea.vmem %s16_s10, 24064  ;;  %p4502_p4 = scmp.lt.s32.totalorder %s16_s10, %s16_s10 }
   0x8   :  { %p4498_p3 = scmp.ne.s32.totalorder %s16_s10, %s4497_s18  ;;  %p4503_p5 = scmp.lt.s32.totalorder %s4497_s18, %s4497_s18 }
   0xa   :  { %p4504_p6 = por %p4503_p5, %p4502_p4 }
   0xc   :  { %p4505_p7 = pnand %p4504_p6, %p4498_p3 }
   0xe   :  { %4508 = shalt.err (!%p4505_p7)
}
   0xf   :  { %s4512_s19 = smov 128   ;;  %s4513_s20 = smov 8  }
  0x10   :  { %21 = dma.hbm_to_vmem [thread:$0]  %s5070_s1, 24064, %s16_s10, [#allocation3], %s4512_s19, %s4512_s19, %s4513_s20  }
  0x11   :  { %4509 = dma.done.wait [#allocation3], 24064  }
  0x12   :  { %4510 = vsyncadd [#allocation3], 4294943232  ;;  %v4514_v0 = vmov 0.0|0.0   ;;  %v31_v1 = vld [vmem:[#allocation2] sm:$0xff]  ;;  %v32_v2 = vld [vmem:[#allocation2 + $0x8] sm:$0xff]  ;;  %vm55_vm0 = vcmask 523264  }
  0x13   :  { %4016 = vmatprep.subr.bf16.mxu0 %v4514_v0  ;;  %v33_v3 = vld [vmem:[#allocation2 + $0x10] sm:$0xff]  ;;  %v4017_v4 = vpack.c.bf16 %v32_v2, %v31_v1  ;;  %v34_v5 = vld [vmem:[#allocation2 + $0x18] sm:$0xff]  ;;  %v35_v7 = vld [vmem:[#allocation2 + $0x20] sm:$0xff]  ;;  %vm133_vm1 = vcmask 64512   ;;  %vm232_vm2 = vcmask 261120   ;;  %vm236_vm3 = vcmask 254976  }
  0x14   :  { %v4020_v6 = vpack.c.bf16 %v34_v5, %v33_v3  ;;  %v36_v8 = vld [vmem:[#allocation2 + $0x28] sm:$0xff]  ;;  %v37_v10 = vld [vmem:[#allocation2 + $0x30] sm:$0xff]  ;;  %v38_v11 = vld [vmem:[#allocation2 + $0x38] sm:$0xff]  ;;  %vm4515_vm4 = vmmov 0   ;;  %vm384_vm5 = vcmask 1041408   ;;  %vm4517_vm6 = vmmov 1  }
  0x15   :  { %4018 = vmatpush1.bf16.msra.mxu0 %v4017_v4  ;;  %v4023_v9 = vpack.c.bf16 %v36_v8, %v35_v7  ;;  %v30_v12 = vld [vmem:[%s5069_s0 + $0x8] sm:$0xff]  ;;  %v4026_v13 = vpack.c.bf16 %v38_v11, %v37_v10  ;;  %v39_v14 = vld [vmem:[#allocation2 + $0x40] sm:$0xff]  ;;  %v41_v17 = vld [vmem:[#allocation2 + $0x50] sm:$0xff]  ;;  %vm368_vm8 = vcmask 80896   ;;  %vm698_vm10 = vcmask 326656   ;;  %s4519_s26 = smov 112  }
  0x16   :  { %4019 = vmatprep.subr.bf16.mxu0 %v4514_v0  ;;  %3119 = vmatprep.mubr.msk.f32.mxu0 %vm55_vm0, %v30_v12  ;;  %v40_v15 = vld [vmem:[#allocation2 + $0x48] sm:$0xff]  ;;  %v42_v18 = vld [vmem:[#allocation2 + $0x58] sm:$0xff]  ;;  %v43_v20 = vld [vmem:[#allocation2 + $0x60] sm:$0xff] }
  0x17   :  { %v4029_v16 = vpack.c.bf16 %v40_v15, %v39_v14  ;;  %v4032_v19 = vpack.c.bf16 %v42_v18, %v41_v17  ;;  %v44_v21 = vld [vmem:[#allocation2 + $0x68] sm:$0xff]  ;;  %v45_v23 = vld [vmem:[#allocation2 + $0x70] sm:$0xff]  ;;  %v46_v24 = vld [vmem:[#allocation2 + $0x78] sm:$0xff]  ;;  %v4516_v14 = vmov 0.0  }
  0x18   :  { %v4035_v22 = vpack.c.bf16 %v44_v21, %v43_v20  ;;  %v4038_v25 = vpack.c.bf16 %v46_v24, %v45_v23  ;;  %v47_v26 = vld [vmem:[#allocation2 + $0x80] sm:$0xff]  ;;  %v48_v27 = vld [vmem:[#allocation2 + $0x88] sm:$0xff]  ;;  %v49_v29 = vld [vmem:[#allocation2 + $0x90] sm:$0xff] }
  0x19   :  { %4021 = vmatpush1.bf16.msra.mxu0 %v4020_v6  ;;  %v4041_v28 = vpack.c.bf16 %v48_v27, %v47_v26  ;;  %v50_v30 = vld [vmem:[#allocation2 + $0x98] sm:$0xff]  ;;  %v51_v32 = vld [vmem:[#allocation2 + $0xa0] sm:$0xff]  ;;  %v52_v33 = vld [vmem:[#allocation2 + $0xa8] sm:$0xff] }
  0x1a   :  { %4022 = vmatprep.subr.bf16.mxu0 %v4514_v0  ;;  %v4044_v31 = vpack.c.bf16 %v50_v30, %v49_v29  ;;  %v4047_v34 = vpack.c.bf16 %v52_v33, %v51_v32  ;;  %v53_v35 = vld [vmem:[#allocation2 + $0xb0] sm:$0xff]  ;;  %v54_v36 = vld [vmem:[#allocation2 + $0xb8] sm:$0xff]  ;;  %v29_v38 = vld [vmem:[%s5069_s0] sm:$0xff]  ;;  %s4518_s0 = smov 120  }
  0x1b   :  { %v4050_v37 = vpack.c.bf16 %v54_v36, %v53_v35  ;;  %v129_v39 = vld [vmem:[#allocation2 + $0xd0] sm:$0xff]  ;;  %v130_v41 = vld [vmem:[#allocation2 + $0xd8] sm:$0x3]  ;;  %v131_v43 = vld [vmem:[#allocation2 + $0xc0] sm:$0xff] }
  0x1c   :  { %3468 = vmatprep.mubr.msk.f32.mxu1 %vm133_vm1, %v129_v39  ;;  %v132_v45 = vld [vmem:[#allocation2 + $0xc8] sm:$0x3]  ;;  %v25_v61 = vld [vmem:[#allocation2 + $0xe0] sm:$0xff]  ;;  %v27_v63 = vld [vmem:[#allocation2 + $0xf0] sm:$0xff] }
  0x1d   :  { %4024 = vmatpush1.bf16.msra.mxu0 %v4023_v9  ;;  %v26_v62 = vld [vmem:[#allocation2 + $0xe8] sm:$0xff]  ;;  %v28_v2 = vld [vmem:[#allocation2 + $0xf8] sm:$0xff]  ;;  %vm4595_vm7 = vmpackc.low %vm384_vm5, %vm4517_vm6 }
  0x1e   :  { %4025 = vmatprep.subr.bf16.mxu0 %v4514_v0  ;;  %v4580_v1 = vpack.c.bf16 %v26_v62, %v25_v61  ;;  %v4582_v3 = vpack.c.bf16 %v28_v2, %v27_v63  ;;  %v261_v18 = vld [vmem:[#allocation2 + $0x210] sm:$0xff]  ;;  %v4601_v21 = vld [vmem:[#allocation2 + $0x100] sm:$0xff]  ;;  %v264_v24 = vld [vmem:[#allocation2 + $0x228] sm:$0xff] }
  0x1f   :  { %v263_v23 = vld [vmem:[#allocation2 + $0x220] sm:$0xff]  ;;  %v265_v27 = vld [vmem:[#allocation2 + $0x230] sm:$0xff]  ;;  %v268_v32 = vld [vmem:[#allocation2 + $0x248] sm:$0xff] }
  0x20   :  { %v4068_v26 = vpack.c.bf16 %v264_v24, %v263_v23  ;;  %v4615_v29 = vld [vmem:[#allocation2 + $0x110] sm:$0xff]  ;;  %v4622_v33 = vld [vmem:[#allocation2 + $0x118] sm:$0xff]  ;;  %v271_v39 = vld [vmem:[#allocation2 + $0x260] sm:$0xff] }
  0x21   :  { %4027 = vmatpush1.bf16.msra.mxu0 %v4026_v13  ;;  %v269_v35 = vld [vmem:[#allocation2 + $0x250] sm:$0xff]  ;;  %v270_v36 = vld [vmem:[#allocation2 + $0x258] sm:$0xff]  ;;  %v279_v23 = vld [vmem:[#allocation2 + $0x2a0] sm:$0xff] }
  0x22   :  { %4028 = vmatprep.subr.bf16.mxu0 %v4514_v0  ;;  %v4653_v62 = vld [vmem:[#allocation2 + $0x150] sm:$0xff]  ;;  %v280_v24 = vld [vmem:[#allocation2 + $0x2a8] sm:$0xff]  ;;  %vm4679_vm9 = vmpackc.low %vm133_vm1, %vm133_vm1 }
  0x23   :  { %v2321_v17 = vld [vmem:[#allocation2 + $0x198] sm:$0xff] }
  0x25   :  { %4030 = vmatpush1.bf16.msra.mxu0 %v4029_v16 }
  0x26   :  { %4031 = vmatprep.subr.bf16.mxu0 %v4514_v0 }
  0x29   :  { %4033 = vmatpush1.bf16.msra.mxu0 %v4032_v19  ;;  %v262_v19 = vld [vmem:[#allocation2 + $0x218] sm:$0xff] }
  0x2a   :  { %4034 = vmatprep.subr.bf16.mxu0 %v4514_v0 }
  0x2d   :  { %4036 = vmatpush1.bf16.msra.mxu0 %v4035_v22  ;;  %v4065_v22 = vpack.c.bf16 %v262_v19, %v261_v18 }
  0x2e   :  { %4037 = vmatprep.subr.bf16.mxu0 %v4514_v0 }
  0x31   :  { %4039 = vmatpush1.bf16.msra.mxu0 %v4038_v25  ;;  %v4608_v25 = vld [vmem:[#allocation2 + $0x108] sm:$0xff] }
  0x32   :  { %4040 = vmatprep.subr.bf16.mxu0 %v4514_v0 }
  0x35   :  { %4042 = vmatpush1.bf16.msra.mxu0 %v4041_v28  ;;  %v266_v28 = vld [vmem:[#allocation2 + $0x238] sm:$0xff] }
  0x36   :  { %4043 = vmatprep.subr.bf16.mxu0 %v4514_v0  ;;  %v4071_v30 = vpack.c.bf16 %v266_v28, %v265_v27 }
  0x39   :  { %4045 = vmatpush1.bf16.msra.mxu0 %v4044_v31  ;;  %v267_v31 = vld [vmem:[#allocation2 + $0x240] sm:$0xff] }
  0x3a   :  { %4046 = vmatprep.subr.bf16.mxu0 %v4514_v0 }
  0x3d   :  { %4048 = vmatpush1.bf16.msra.mxu0 %v4047_v34  ;;  %v4074_v34 = vpack.c.bf16 %v268_v32, %v267_v31  ;;  %v281_v31 = vld [vmem:[#allocation2 + $0x2b0] sm:$0xff] }
  0x3e   :  { %4049 = vmatprep.subr.bf16.mxu0 %v4514_v0 }
  0x41   :  { %4051 = vmatpush1.bf16.msra.mxu0 %v4050_v37  ;;  %v4629_v37 = vld [vmem:[#allocation2 + $0x120] sm:$0xff] }
  0x42   :  { %4096 = vmatprep.subr.bf16.mxu0 %v4514_v0 }
  0x44   :  { %124 = vmatmul.mubr.f32.vlgmr.msra.gmra.mrb[0].mxu0 %v29_v38  ;;  %v4077_v38 = vpack.c.bf16 %v270_v36, %v269_v35 }
  0x45   :  { %3583 = vmatprep.mubr.msk.f32.mxu0 %vm4515_vm4, %v4516_v14 }
 0x117   :  { %v125_v40 = vpop.f32.mrb[0].mxu0 }
 0x118   :  { %v127_v42 = vpop.f32.mrb[1].mxu0  ;;  %3466 = vmatprep.subr.mxu1 %v125_v40 }
 0x119   :  { %3467 = vmatpush3.msra.mxu1 %v125_v40  ;;  %v272_v40 = vld [vmem:[#allocation2 + $0x268] sm:$0xff]  ;;  %v273_v42 = vld [vmem:[#allocation2 + $0x270] sm:$0xff] }
 0x11a   :  { %3469 = vmatmul.mubr.msk.f32.vlgmr.msra.gmra.mrb[0].mxu1 %vm133_vm1, %v130_v41  ;;  %4053 = vmatprep.subr.bf16.mxu1 %v4580_v1  ;;  %v4080_v41 = vpack.c.bf16 %v272_v40, %v271_v39 }
 0x11b   :  { %4055 = vmatpush3.bf16.msra.mxu1 %v4580_v1 }
 0x11c   :  { %4057 = vmatprep.subr.bf16.mxu1 %v4582_v3 }
 0x11f   :  { %4059 = vmatpush3.bf16.msra.mxu1 %v4582_v3 }
 0x120   :  { %4060 = vmatprep.subr.bf16.mxu1 %v4514_v0 }
 0x1ed   :  { %v3470_v44 = vpop.f32.mrb[0].mxu1 }
 0x1ee   :  { %v206_v46 = vpop.f32.mrb[1].mxu1  ;;  %v4570_v48 = vadd.f32 %v3470_v44, %v132_v45  ;;  %v275_v45 = vld [vmem:[#allocation2 + $0x280] sm:$0xff] }
 0x1ef   :  { %v4568_v47 = vadd.f32 %v206_v46, %v131_v43  ;;  %v274_v43 = vld [vmem:[#allocation2 + $0x278] sm:$0xff]  ;;  %v276_v46 = vld [vmem:[#allocation2 + $0x288] sm:$0xff] }
 0x1f0   :  { %v237_v50 = vsel %vm236_vm3, %v4570_v48, 0.0  ;;  %v4083_v44 = vpack.c.bf16 %v274_v43, %v273_v42 }
 0x1f1   :  { %v233_v49 = vsel %vm232_vm2, %v4568_v47, 0.0 }
 0x1f2   :  { %234 = vadd.xlane.f32.xlu0 %v233_v49  ;;  %v4086_v49 = vpack.c.bf16 %v276_v46, %v275_v45 }
 0x1f6   :  { %238 = vadd.xlane.f32.xlu0 %v237_v50  ;;  %v4640_v50 = vld [vmem:[#allocation2 + $0x138] sm:$0xff] }
 0x27f   :  { %v235_v51 = vpop.xlane.xlu0 %234 }
 0x280   :  { %v241_v52 = vmul.f32 0.03125, %v235_v51 }
 0x282   :  { %v243_v53 = vsub.f32 %v4568_v47, %v241_v52 }
 0x283   :  { %v239_v54 = vpop.xlane.xlu0 %238 }
 0x284   :  { %v242_v55 = vmul.f32 0.03125, %v239_v54  ;;  %v245_v56 = vmul.f32 %v243_v53, %v243_v53  ;;  %v4643_v54 = vld [vmem:[#allocation2 + $0x140] sm:$0xff] }
 0x286   :  { %v244_v57 = vsub.f32 %v4570_v48, %v242_v55  ;;  %v247_v58 = vsel %vm232_vm2, %v245_v56, 0.0 }
 0x287   :  { %248 = vadd.xlane.f32.xlu1 %v247_v58  ;;  %v4648_v58 = vld [vmem:[#allocation2 + $0x148] sm:$0xff] }
 0x288   :  { %v246_v59 = vmul.f32 %v244_v57, %v244_v57 }
 0x28a   :  { %v250_v60 = vsel %vm236_vm3, %v246_v59, 0.0 }
 0x28b   :  { %251 = vadd.xlane.f32.xlu1 %v250_v60 }
 0x314   :  { %v249_v4 = vpop.xlane.xlu1 %248 }
 0x315   :  { %v253_v5 = vmul.f32 0.03125, %v249_v4 }
 0x317   :  { %v255_v6 = vadd.f32 1e-12, %v253_v5  ;;  %v4658_v5 = vld [vmem:[#allocation2 + $0x158] sm:$0xff] }
 0x318   :  { %v252_v7 = vpop.xlane.xlu1 %251 }
 0x319   :  { %4399 = vrsqrt.f32 %v255_v6  ;;  %v254_v8 = vmul.f32 0.03125, %v252_v7 }
 0x31b   :  { %v256_v9 = vadd.f32 1e-12, %v254_v8 }
 0x31d   :  { %4401 = vrsqrt.f32 %v256_v9 }
 0x323   :  { %v4400_v10 = vpop.eup %4399 }
 0x324   :  { %v259_v11 = vmul.f32 %v4400_v10, %v243_v53 }
 0x326   :  { %3479 = vmatprep.mubr.msk.f32.mxu1 %vm232_vm2, %v259_v11  ;;  %v277_v11 = vld [vmem:[#allocation2 + $0x290] sm:$0xff] }
 0x327   :  { %v4402_v12 = vpop.eup %4401 }
 0x328   :  { %v260_v13 = vmul.f32 %v4402_v12, %v244_v57  ;;  %v278_v12 = vld [vmem:[#allocation2 + $0x298] sm:$0xff] }
 0x32a   :  { %3480 = vmatmul.mubr.msk.f32.vlgmr.msra.gmra.mrb[2].mxu1 %vm232_vm2, %v260_v13 }
 0x32b   :  { %3486 = vmatprep.mubr.msk.f32.mxu1 %vm4515_vm4, %v4516_v14 }
 0x3fd   :  { %v3481_v15 = vpop.f32.mrb[2].mxu1 }
 0x3fe   :  { %v359_v16 = vpop.f32.mrb[3].mxu1 }
 0x3ff   :  { %v4061_v20 = vpack.c.bf16 %v3481_v15, %v359_v16 }
 0x401   :  { %4063 = vmatpush3.bf16.msk.msra.mxu1 %vm4595_vm7, %v4061_v20 }
 0x402   :  { %4064 = vmatprep.subr.bf16.mxu1 %v4514_v0 }
 0x404   :  { %3487 = vmatmul.mubr.msk.f32.vlgmr.msra.gmra.mrb[4].mxu1 %vm368_vm8, %v4601_v21 }
 0x405   :  { %3489 = vmatprep.mubr.msk.f32.mxu1 %vm4515_vm4, %v4516_v14  ;;  %4066 = vmatpush3.bf16.msra.mxu1 %v4065_v22 }
 0x406   :  { %4067 = vmatprep.subr.bf16.mxu1 %v4514_v0 }
 0x408   :  { %3490 = vmatmul.mubr.msk.f32.gmra.mrb[6].mxu1 %vm368_vm8, %v4608_v25 }
 0x409   :  { %3492 = vmatprep.mubr.msk.f32.mxu1 %vm4515_vm4, %v4516_v14  ;;  %4069 = vmatpush3.bf16.msra.mxu1 %v4068_v26 }
 0x40a   :  { %4070 = vmatprep.subr.bf16.mxu1 %v4514_v0 }
 0x40c   :  { %3493 = vmatmul.mubr.msk.f32.gmra.mrb[8].mxu1 %vm368_vm8, %v4615_v29 }
 0x40d   :  { %3495 = vmatprep.mubr.msk.f32.mxu1 %vm4515_vm4, %v4516_v14  ;;  %4072 = vmatpush3.bf16.msra.mxu1 %v4071_v30 }
 0x40e   :  { %4073 = vmatprep.subr.bf16.mxu1 %v4514_v0 }
 0x410   :  { %3496 = vmatmul.mubr.msk.f32.gmra.mrb[10].mxu1 %vm368_vm8, %v4622_v33 }
 0x411   :  { %3498 = vmatprep.mubr.msk.f32.mxu1 %vm4515_vm4, %v4516_v14  ;;  %4075 = vmatpush3.bf16.msra.mxu1 %v4074_v34 }
 0x412   :  { %4076 = vmatprep.subr.bf16.mxu1 %v4514_v0 }
 0x414   :  { %3499 = vmatmul.mubr.msk.f32.gmra.mrb[12].mxu1 %vm368_vm8, %v4629_v37 }
 0x415   :  { %4078 = vmatpush3.bf16.msra.mxu1 %v4077_v38  ;;  %3533 = vmatprep.mubr.msk.f32.mxu1 %vm4515_vm4, %v4516_v14 }
 0x416   :  { %4079 = vmatprep.subr.bf16.mxu1 %v4514_v0 }
 0x419   :  { %4081 = vmatpush3.bf16.msra.mxu1 %v4080_v41  ;;  %v2331_v41 = vld [vmem:[#allocation2 + $0x1e8] sm:$0xff] }
 0x41a   :  { %4082 = vmatprep.subr.bf16.mxu1 %v4514_v0 }
 0x41d   :  { %4084 = vmatpush3.bf16.msra.mxu1 %v4083_v44 }
 0x41e   :  { %4085 = vmatprep.subr.bf16.mxu1 %v4514_v0 }
 0x421   :  { %4087 = vmatpush3.bf16.msra.mxu1 %v4086_v49 }
 0x422   :  { %4088 = vmatprep.subr.bf16.mxu1 %v4514_v0 }
 0x4d7   :  { %v454_v51 = vpop.f32.mrb[4].mxu1 }
 0x4d8   :  { %v478_v52 = vmul.f32 %v454_v51, %v4640_v50  ;;  %v3488_v53 = vpop.f32.mrb[5].mxu1  ;;  %v4704_v51 = vld [vmem:[#allocation2 + $0x160] sm:$0xff] }
 0x4da   :  { %3534 = vmatmul.mubr.f32.vlgmr.msra.gmra.mrb[14].mxu1 %v478_v52 }
 0x4db   :  { %v459_v55 = vpop.f32.mrb[6].mxu1  ;;  %3536 = vmatprep.mubr.msk.f32.mxu1 %vm4515_vm4, %v4516_v14 }
 0x4dc   :  { %v479_v56 = vmul.f32 %v459_v55, %v4643_v54  ;;  %v3491_v57 = vpop.f32.mrb[7].mxu1 }
 0x4de   :  { %3537 = vmatmul.mubr.f32.gmra.mrb[16].mxu1 %v479_v56  ;;  %v4707_v56 = vld [vmem:[#allocation2 + $0x168] sm:$0xff] }
 0x4df   :  { %v464_v59 = vpop.f32.mrb[8].mxu1  ;;  %3539 = vmatprep.mubr.msk.f32.mxu1 %vm4515_vm4, %v4516_v14 }
 0x4e0   :  { %v480_v60 = vmul.f32 %v464_v59, %v4648_v58  ;;  %v3494_v61 = vpop.f32.mrb[9].mxu1 }
 0x4e2   :  { %3540 = vmatmul.mubr.f32.gmra.mrb[18].mxu1 %v480_v60 }
 0x4e3   :  { %v469_v63 = vpop.f32.mrb[10].mxu1  ;;  %3542 = vmatprep.mubr.msk.f32.mxu1 %vm4515_vm4, %v4516_v14 }
 0x4e4   :  { %v481_v2 = vmul.f32 %v469_v63, %v4653_v62  ;;  %v3497_v4 = vpop.f32.mrb[11].mxu1  ;;  %v4711_v63 = vld [vmem:[#allocation2 + $0x170] sm:$0xff] }
 0x4e6   :  { %3543 = vmatmul.mubr.f32.gmra.mrb[20].mxu1 %v481_v2 }
 0x4e7   :  { %v474_v6 = vpop.f32.mrb[12].mxu1  ;;  %3545 = vmatprep.mubr.msk.f32.mxu1 %vm4515_vm4, %v4516_v14 }
 0x4e8   :  { %v482_v7 = vmul.f32 %v474_v6, %v4658_v5  ;;  %v3500_v8 = vpop.f32.mrb[13].mxu1 }
 0x4e9   :  { %v4715_v8 = vld [vmem:[#allocation2 + $0x178] sm:$0xff] }
 0x4ea   :  { %3546 = vmatmul.mubr.f32.gmra.mrb[22].mxu1 %v482_v7 }
 0x4eb   :  { %3558 = vmatprep.mubr.msk.f32.mxu1 %vm4515_vm4, %v4516_v14 }
 0x5ad   :  { %v549_v9 = vpop.f32.mrb[14].mxu1 }
 0x5ae   :  { %v3535_v10 = vpop.f32.mrb[15].mxu1  ;;  %v550_v15 = vadd.f32 %v549_v9, %v277_v11 }
 0x5b1   :  { %v554_v13 = vpop.f32.mrb[16].mxu1 }
 0x5b2   :  { %v555_v16 = vadd.f32 %v554_v13, %v278_v12  ;;  %v3538_v18 = vpop.f32.mrb[17].mxu1  ;;  %v4719_v13 = vld [vmem:[#allocation2 + $0x180] sm:$0xff] }
 0x5b4   :  { %v4665_v19 = vpack.i.bf16 %v555_v16, %v550_v15 }
 0x5b5   :  { %v559_v20 = vpop.f32.mrb[18].mxu1 }
 0x5b6   :  { %4340 = vrot.lane.b32.xlu0 %v4665_v19, %s4518_s0  ;;  %v3541_v22 = vpop.f32.mrb[19].mxu1  ;;  %v560_v27 = vadd.f32 %v559_v20, %v279_v23 }
 0x5b9   :  { %v564_v26 = vpop.f32.mrb[20].mxu1 }
 0x5ba   :  { %v565_v28 = vadd.f32 %v564_v26, %v280_v24  ;;  %v3544_v30 = vpop.f32.mrb[21].mxu1 }
 0x5bc   :  { %v4669_v32 = vpack.i.bf16 %v565_v28, %v560_v27 }
 0x5bd   :  { %v569_v34 = vpop.f32.mrb[22].mxu1 }
 0x5be   :  { %4345 = vrot.lane.b32.xlu1 %v4669_v32, %s4518_s0  ;;  %v4673_v35 = vadd.f32 %v569_v34, %v281_v31  ;;  %v3547_v36 = vpop.f32.mrb[23].mxu1 }
 0x5c2   :  { %586 = vrot.lane.b32.xlu1 %v4673_v35, %s4518_s0 }
 0x628   :  { %v4341_v38 = vpop.permute.xlu0 %4340 }
 0x629   :  { %v4343_v39 = vunpack.i.h.bf16 %v4341_v38  ;;  %v4342_v40 = vunpack.i.l.bf16 %v4341_v38 }
 0x62b   :  { %v4089_v42 = vpack.c.bf16 %v4343_v39, %v4342_v40 }
 0x62d   :  { %4091 = vmatpush3.bf16.xpose.msk.msra.mxu1 %vm4679_vm9, %v4089_v42 }
 0x62e   :  { %4092 = vmatprep.subr.bf16.mxu1 %v4514_v0 }
 0x630   :  { %v4346_v43 = vpop.permute.xlu1 %4345 }
 0x631   :  { %v4348_v44 = vunpack.i.h.bf16 %v4346_v43  ;;  %v4347_v45 = vunpack.i.l.bf16 %v4346_v43 }
 0x633   :  { %v4093_v46 = vpack.c.bf16 %v4348_v44, %v4347_v45 }
 0x634   :  { %v587_v49 = vpop.permute.xlu1 %586 }
 0x635   :  { %4095 = vmatpush3.bf16.xpose.msk.msra.mxu1 %vm4679_vm9, %v4093_v46 }
 0x636   :  { %3556 = vmatprep.subr.mxu1 %v4516_v14 }
 0x63d   :  { %3557 = vmatpush3.xpose.msk.msra.mxu1 %vm133_vm1, %v587_v49 }
 0x640   :  { %3559 = vmatmul.mubr.msk.f32.vlgmr.msra.gmra.mrb[24].mxu1 %vm133_vm1, %v550_v15 }
 0x641   :  { %3561 = vmatprep.mubr.msk.f32.mxu1 %vm4515_vm4, %v4516_v14 }
 0x644   :  { %3562 = vmatmul.mubr.msk.f32.gmra.mrb[26].mxu1 %vm133_vm1, %v555_v16 }
 0x645   :  { %3564 = vmatprep.mubr.msk.f32.mxu1 %vm4515_vm4, %v4516_v14 }
 0x648   :  { %3565 = vmatmul.mubr.msk.f32.gmra.mrb[28].mxu1 %vm133_vm1, %v560_v27 }
 0x649   :  { %3567 = vmatprep.mubr.msk.f32.mxu1 %vm4515_vm4, %v4516_v14 }
 0x64c   :  { %3568 = vmatmul.mubr.msk.f32.gmra.mrb[30].mxu1 %vm133_vm1, %v565_v28 }
 0x64d   :  { %3570 = vmatprep.mubr.msk.f32.mxu1 %vm4515_vm4, %v4516_v14 }
 0x650   :  { %3571 = vmatmul.mubr.msk.f32.gmra.mrb[32].mxu1 %vm133_vm1, %v4673_v35 }
 0x713   :  { %v674_v52 = vpop.f32.mrb[24].mxu1 }
 0x714   :  { %v675_v53 = vadd.f32 %v674_v52, %v4704_v51  ;;  %v3560_v55 = vpop.f32.mrb[25].mxu1 }
 0x716   :  { %v699_v57 = vsel %vm698_vm10, %v675_v53, -inf }
 0x717   :  { %700 = vmax.xlane.f32.xlu1 %v699_v57  ;;  %v679_v59 = vpop.f32.mrb[26].mxu1 }
 0x718   :  { %v680_v60 = vadd.f32 %v679_v59, %v4707_v56  ;;  %v3563_v61 = vpop.f32.mrb[27].mxu1 }
 0x71a   :  { %v702_v2 = vsel %vm698_vm10, %v680_v60, -inf }
 0x71b   :  { %703 = vmax.xlane.f32.xlu0 %v702_v2  ;;  %v684_v4 = vpop.f32.mrb[28].mxu1 }
 0x71c   :  { %v685_v6 = vadd.f32 %v684_v4, %v4711_v63  ;;  %v3566_v7 = vpop.f32.mrb[29].mxu1 }
 0x71e   :  { %v705_v9 = vsel %vm698_vm10, %v685_v6, -inf }
 0x71f   :  { %706 = vmax.xlane.f32.xlu0 %v705_v9  ;;  %v689_v10 = vpop.f32.mrb[30].mxu1 }
 0x720   :  { %v690_v11 = vadd.f32 %v689_v10, %v4715_v8  ;;  %v3569_v12 = vpop.f32.mrb[31].mxu1 }
 0x722   :  { %v708_v15 = vsel %vm698_vm10, %v690_v11, -inf }
 0x723   :  { %709 = vmax.xlane.f32.xlu0 %v708_v15  ;;  %v694_v16 = vpop.f32.mrb[32].mxu1 }
 0x724   :  { %v695_v18 = vadd.f32 %v694_v16, %v4719_v13  ;;  %v3572_v20 = vpop.f32.mrb[33].mxu1 }
 0x726   :  { %v711_v22 = vsel %vm698_vm10, %v695_v18, -inf }
 0x727   :  { %712 = vmax.xlane.f32.xlu1 %v711_v22 }
 0x7a4   :  { %v701_v23 = vpop.xlane.xlu1 %700 }
 0x7a5   :  { %v714_v24 = vsub.f32 %v675_v53, %v701_v23 }
 0x7a7   :  { %v719_v26 = vmul.f32 1.442695, %v714_v24 }
 0x7a8   :  { %v704_v27 = vpop.xlane.xlu0 %703 }
 0x7a9   :  { %4403 = vpow2.f32 %v719_v26  ;;  %v715_v28 = vsub.f32 %v680_v60, %v704_v27 }
 0x7ab   :  { %v721_v30 = vmul.f32 1.442695, %v715_v28 }
 0x7ac   :  { %v707_v31 = vpop.xlane.xlu0 %706 }
 0x7ad   :  { %4405 = vpow2.f32 %v721_v30  ;;  %v716_v34 = vsub.f32 %v685_v6, %v707_v31 }
 0x7af   :  { %v723_v36 = vmul.f32 1.442695, %v716_v34 }
 0x7b0   :  { %v710_v45 = vpop.xlane.xlu0 %709 }
 0x7b1   :  { %4407 = vpow2.f32 %v723_v36  ;;  %v717_v46 = vsub.f32 %v690_v11, %v710_v45  ;;  %v4750_v36 = vld [vmem:[#allocation2 + $0x128] sm:$0xff] }
 0x7b3   :  { %v4404_v38 = vpop.eup %4403  ;;  %v725_v52 = vmul.f32 1.442695, %v717_v46 }
 0x7b4   :  { %v729_v39 = vsel %vm698_vm10, %v4404_v38, 0.0  ;;  %v713_v49 = vpop.xlane.xlu1 %712 }
 0x7b5   :  { %730 = vadd.xlane.f32.xlu0 %v729_v39  ;;  %v718_v53 = vsub.f32 %v695_v18, %v713_v49  ;;  %4409 = vpow2.f32 %v725_v52 }
 0x7b7   :  { %v4406_v40 = vpop.eup %4405  ;;  %v727_v55 = vmul.f32 1.442695, %v718_v53  ;;  %v282_v53 = vld [vmem:[#allocation2 + $0x2b8] sm:$0xff] }
 0x7b8   :  { %v732_v42 = vsel %vm698_vm10, %v4406_v40, 0.0 }
 0x7b9   :  { %733 = vadd.xlane.f32.xlu1 %v732_v42  ;;  %4411 = vpow2.f32 %v727_v55  ;;  %v283_v55 = vld [vmem:[#allocation2 + $0x2c0] sm:$0xff] }
 0x7bb   :  { %v4408_v43 = vpop.eup %4407 }
 0x7bc   :  { %v735_v44 = vsel %vm698_vm10, %v4408_v43, 0.0 }
 0x7bd   :  { %736 = vadd.xlane.f32.xlu0 %v735_v44 }
 0x7bf   :  { %v4410_v57 = vpop.eup %4409 }
 0x7c0   :  { %v738_v59 = vsel %vm698_vm10, %v4410_v57, 0.0 }
 0x7c3   :  { %v4412_v60 = vpop.eup %4411 }
 0x7c4   :  { %v741_v61 = vsel %vm698_vm10, %v4412_v60, 0.0 }
 0x7ca   :  { %4355 = vrot.lane.b32.xlu1 %v4669_v32, %s4519_s26 }
 0x7d3   :  { %4350 = vrot.lane.b32.xlu0 %v4665_v19, %s4519_s26 }
 0x7ee   :  { %739 = vadd.xlane.f32.xlu1 %v738_v59  ;;  %v284_v59 = vld [vmem:[#allocation2 + $0x2c8] sm:$0xff] }
 0x7f2   :  { %742 = vadd.xlane.f32.xlu1 %v741_v61 }
 0x803   :  { %762 = vrot.lane.b32.xlu1 %v4673_v35, %s4519_s26 }
 0x842   :  { %v731_v19 = vpop.xlane.xlu0 %730 }
 0x843   :  { %4413 = vrcp.f32 %v731_v19  ;;  %v4110_v19 = vpack.c.bf16 %v283_v55, %v282_v53 }
 0x846   :  { %v734_v32 = vpop.xlane.xlu1 %733 }
 0x847   :  { %4415 = vrcp.f32 %v734_v32  ;;  %v4754_v32 = vld [vmem:[#allocation2 + $0x130] sm:$0x3] }
 0x84a   :  { %v737_v2 = vpop.xlane.xlu0 %736  ;;  %v4356_v4 = vpop.permute.xlu1 %4355 }
 0x84b   :  { %v4358_v10 = vunpack.i.h.bf16 %v4356_v4  ;;  %v4357_v11 = vunpack.i.l.bf16 %v4356_v4  ;;  %4417 = vrcp.f32 %v737_v2 }
 0x84d   :  { %v4100_v15 = vpack.c.bf16 %v4358_v10, %v4357_v11  ;;  %v4414_v18 = vpop.eup %4413 }
 0x84e   :  { %v4351_v6 = vpop.permute.xlu0 %4350  ;;  %v749_v20 = vmul.f32 %v4414_v18, %v4404_v38 }
 0x84f   :  { %v4353_v7 = vunpack.i.h.bf16 %v4351_v6  ;;  %v4352_v9 = vunpack.i.l.bf16 %v4351_v6 }
 0x851   :  { %v4097_v12 = vpack.c.bf16 %v4353_v7, %v4352_v9  ;;  %v4416_v23 = vpop.eup %4415  ;;  %v3147_v7 = vld [vmem:[#allocation2 + $0x2d8] ss:$0 sm:$0xff] }
 0x852   :  { %v750_v24 = vmul.f32 %v4416_v23, %v4406_v40 }
 0x853   :  { %4098 = vmatpush3.bf16.msra.mxu0 %v4097_v12 }
 0x854   :  { %4099 = vmatprep.subr.bf16.mxu0 %v4514_v0 }
 0x855   :  { %v4418_v26 = vpop.eup %4417 }
 0x856   :  { %v751_v27 = vmul.f32 %v4418_v26, %v4408_v43 }
 0x857   :  { %4101 = vmatpush3.bf16.msra.mxu0 %v4100_v15 }
 0x858   :  { %3581 = vmatprep.subr.mxu0 %v4516_v14 }
 0x87b   :  { %v740_v35 = vpop.xlane.xlu1 %739 }
 0x87c   :  { %4419 = vrcp.f32 %v740_v35 }
 0x87f   :  { %v743_v16 = vpop.xlane.xlu1 %742 }
 0x880   :  { %4421 = vrcp.f32 %v743_v16 }
 0x883   :  { %v763_v22 = vpop.permute.xlu1 %762 }
 0x884   :  { %3582 = vmatpush3.msra.mxu0 %v763_v22 }
 0x885   :  { %3584 = vmatmul.mubr.msk.f32.vlgmr.msra.gmra.mrb[2].mxu0 %vm698_vm10, %v749_v20 }
 0x886   :  { %3586 = vmatprep.mubr.msk.f32.mxu0 %vm4515_vm4, %v4516_v14  ;;  %v4420_v28 = vpop.eup %4419 }
 0x887   :  { %v752_v30 = vmul.f32 %v4420_v28, %v4410_v57 }
 0x889   :  { %3587 = vmatmul.mubr.msk.f32.gmra.mrb[4].mxu0 %vm698_vm10, %v750_v24 }
 0x88a   :  { %3589 = vmatprep.mubr.msk.f32.mxu0 %vm4515_vm4, %v4516_v14  ;;  %v4422_v31 = vpop.eup %4421 }
 0x88b   :  { %v753_v34 = vmul.f32 %v4422_v31, %v4412_v60  ;;  %v285_v60 = vld [vmem:[#allocation2 + $0x2d0] sm:$0xff]  ;;  %v1068_v31 = vld [vmem:[#allocation2 + $0x2e0] sm:$0xff] }
 0x88c   :  { %v4114_v2 = vpack.c.bf16 %v285_v60, %v284_v59 }
 0x88d   :  { %3590 = vmatmul.mubr.msk.f32.gmra.mrb[6].mxu0 %vm698_vm10, %v751_v27 }
 0x88e   :  { %3592 = vmatprep.mubr.msk.f32.mxu0 %vm4515_vm4, %v4516_v14 }
 0x891   :  { %3593 = vmatmul.mubr.msk.f32.gmra.mrb[8].mxu0 %vm698_vm10, %v752_v30 }
 0x892   :  { %3595 = vmatprep.mubr.msk.f32.mxu0 %vm4515_vm4, %v4516_v14 }
 0x895   :  { %3596 = vmatmul.mubr.msk.f32.gmra.mrb[10].mxu0 %vm698_vm10, %v753_v34  ;;  %v1069_v34 = vld [vmem:[#allocation2 + $0x2e8] sm:$0xff] }
 0x896   :  { %3608 = vmatprep.mubr.msk.f32.mxu0 %vm698_vm10, %v4750_v36 }
 0x958   :  { %v850_v38 = vpop.f32.mrb[2].mxu0 }
 0x959   :  { %v3585_v39 = vpop.f32.mrb[3].mxu0 }
 0x95a   :  { %v1070_v39 = vld [vmem:[#allocation2 + $0x2f0] sm:$0xff] }
 0x95c   :  { %v855_v40 = vpop.f32.mrb[4].mxu0 }
 0x95d   :  { %v4102_v42 = vpack.c.bf16 %v855_v40, %v850_v38  ;;  %v3588_v43 = vpop.f32.mrb[5].mxu0  ;;  %v4118_v38 = vpack.c.bf16 %v1069_v34, %v1068_v31  ;;  %v1071_v40 = vld [vmem:[#allocation2 + $0x2f8] sm:$0xff]  ;;  %v3150_v34 = vld [vmem:[#allocation2 + $0x300] ss:$0 sm:$0xff] }
 0x95e   :  { %v1176_v43 = vld [vmem:[#allocation2 + $0x308] sm:$0xff] }
 0x95f   :  { %4103 = vmatprep.subr.bf16.mxu0 %v4102_v42  ;;  %4119 = vmatprep.subr.bf16.mxu1 %v4118_v38 }
 0x960   :  { %v860_v44 = vpop.f32.mrb[6].mxu0  ;;  %4105 = vmatpush3.bf16.msra.mxu0 %v4102_v42  ;;  %4121 = vmatpush3.bf16.msra.mxu1 %v4118_v38  ;;  %v4122_v42 = vpack.c.bf16 %v1071_v40, %v1070_v39 }
 0x961   :  { %v3591_v45 = vpop.f32.mrb[7].mxu0 }
 0x962   :  { %4123 = vmatprep.subr.bf16.mxu1 %v4122_v42 }
 0x964   :  { %v865_v46 = vpop.f32.mrb[8].mxu0  ;;  %4125 = vmatpush3.bf16.msra.mxu1 %v4122_v42 }
 0x965   :  { %v4106_v49 = vpack.c.bf16 %v865_v46, %v860_v44  ;;  %v3594_v52 = vpop.f32.mrb[9].mxu0  ;;  %4159 = vmatprep.subr.bf16.mxu1 %v4580_v1  ;;  %v1177_v44 = vld [vmem:[#allocation2 + $0x310] sm:$0xff] }
 0x966   :  { %v4126_v45 = vpack.c.bf16 %v1177_v44, %v1176_v43 }
 0x967   :  { %4107 = vmatprep.subr.bf16.mxu0 %v4106_v49 }
 0x968   :  { %v870_v57 = vpop.f32.mrb[10].mxu0  ;;  %4109 = vmatpush3.bf16.msra.mxu0 %v4106_v49 }
 0x969   :  { %v3597_v61 = vpop.f32.mrb[11].mxu0  ;;  %3606 = vmatprep.subr.mxu0 %v870_v57 }
 0x96c   :  { %3607 = vmatpush3.msra.mxu0 %v870_v57 }
 0x96d   :  { %3609 = vmatmul.mubr.msk.f32.vlgmr.msra.gmra.mrb[12].mxu0 %vm698_vm10, %v4754_v32  ;;  %4111 = vmatprep.subr.bf16.mxu0 %v4110_v19 }
 0x96e   :  { %4113 = vmatpush3.bf16.msra.mxu0 %v4110_v19 }
 0x96f   :  { %4115 = vmatprep.subr.bf16.mxu0 %v4114_v2 }
 0x972   :  { %4117 = vmatpush3.bf16.msra.mxu0 %v4114_v2  ;;  %v1178_v2 = vld [vmem:[#allocation2 + $0x318] sm:$0xff] }
 0x973   :  { %4127 = vmatprep.subr.bf16.mxu0 %v4126_v45 }
 0xa40   :  { %v3610_v4 = vpop.f32.mrb[12].mxu0 }
 0xa41   :  { %v946_v6 = vpop.f32.mrb[13].mxu0 }
 0xa42   :  { %3619 = vmatprep.mubr.msk.f32.mxu0 %vm232_vm2, %v946_v6 }
 0xa43   :  { %3620 = vmatmul.mubr.msk.f32.vlgmr.msra.gmra.mrb[14].mxu0 %vm232_vm2, %v3610_v4  ;;  %v1179_v4 = vld [vmem:[#allocation2 + $0x320] sm:$0xff] }
 0xa44   :  { %4129 = vmatpush3.bf16.msra.mxu0 %v4126_v45  ;;  %v4130_v6 = vpack.c.bf16 %v1179_v4, %v1178_v2 }
 0xa46   :  { %4131 = vmatprep.subr.bf16.mxu0 %v4130_v6 }
 0xa48   :  { %4133 = vmatpush3.bf16.msra.mxu0 %v4130_v6 }
 0xb16   :  { %v3621_v9 = vpop.f32.mrb[14].mxu0 }
 0xb17   :  { %v1037_v10 = vadd.f32 %v3621_v9, %v3147_v7  ;;  %v1031_v11 = vpop.f32.mrb[15].mxu0  ;;  %v1181_v9 = vld [vmem:[#allocation2 + $0x330] sm:$0xff] }
 0xb18   :  { %v1032_v12 = vadd.f32 %v3147_v7, %v1031_v11  ;;  %v1180_v7 = vld [vmem:[#allocation2 + $0x328] sm:$0xff]  ;;  %v1182_v11 = vld [vmem:[#allocation2 + $0x338] sm:$0xff] }
 0xb19   :  { %v4761_v15 = vadd.f32 %v1037_v10, %v4570_v48  ;;  %v4134_v10 = vpack.c.bf16 %v1181_v9, %v1180_v7 }
 0xb1a   :  { %v4764_v35 = vadd.f32 %v1032_v12, %v4568_v47  ;;  %v1183_v12 = vld [vmem:[#allocation2 + $0x340] sm:$0xff] }
 0xb1b   :  { %v1045_v16 = vsel %vm236_vm3, %v4761_v15, 0.0  ;;  %4135 = vmatprep.subr.bf16.mxu0 %v4134_v10 }
 0xb1c   :  { %1046 = vadd.xlane.f32.xlu1 %v1045_v16  ;;  %v1042_v18 = vsel %vm232_vm2, %v4764_v35, 0.0  ;;  %4137 = vmatpush3.bf16.msra.mxu0 %v4134_v10  ;;  %v4138_v16 = vpack.c.bf16 %v1183_v12, %v1182_v11  ;;  %v3153_v11 = vld [vmem:[#allocation2 + $0x388] ss:$0 sm:$0xff] }
 0xb1d   :  { %1043 = vadd.xlane.f32.xlu0 %v1042_v18  ;;  %v1184_v18 = vld [vmem:[#allocation2 + $0x348] sm:$0xff] }
 0xb1e   :  { %4139 = vmatprep.subr.bf16.mxu0 %v4138_v16 }
 0xb20   :  { %4141 = vmatpush3.bf16.msra.mxu0 %v4138_v16 }
 0xba9   :  { %v1047_v20 = vpop.xlane.xlu1 %1046 }
 0xbaa   :  { %v1049_v22 = vmul.f32 0.03125, %v1047_v20  ;;  %v1044_v23 = vpop.xlane.xlu0 %1043  ;;  %v1185_v20 = vld [vmem:[#allocation2 + $0x350] sm:$0xff] }
 0xbab   :  { %v1048_v24 = vmul.f32 0.03125, %v1044_v23  ;;  %v4142_v23 = vpack.c.bf16 %v1185_v20, %v1184_v18 }
 0xbac   :  { %v1051_v26 = vsub.f32 %v4761_v15, %v1049_v22  ;;  %v1186_v22 = vld [vmem:[#allocation2 + $0x358] sm:$0xff] }
 0xbad   :  { %v1050_v48 = vsub.f32 %v4764_v35, %v1048_v24  ;;  %v1187_v24 = vld [vmem:[#allocation2 + $0x360] sm:$0xff]  ;;  %4143 = vmatprep.subr.bf16.mxu0 %v4142_v23 }
 0xbae   :  { %v1053_v28 = vmul.f32 %v1051_v26, %v1051_v26  ;;  %4145 = vmatpush3.bf16.msra.mxu0 %v4142_v23 }
 0xbaf   :  { %v1052_v27 = vmul.f32 %v1050_v48, %v1050_v48 }
 0xbb0   :  { %v1057_v30 = vsel %vm236_vm3, %v1053_v28, 0.0  ;;  %v1190_v28 = vld [vmem:[#allocation2 + $0x378] sm:$0xff] }
 0xbb1   :  { %v1054_v47 = vsel %vm232_vm2, %v1052_v27, 0.0  ;;  %v1189_v27 = vld [vmem:[#allocation2 + $0x370] sm:$0xff] }
 0xbb2   :  { %1055 = vadd.xlane.f32.xlu0 %v1054_v47 }
 0xbb6   :  { %1058 = vadd.xlane.f32.xlu0 %v1057_v30  ;;  %v1191_v30 = vld [vmem:[#allocation2 + $0x380] sm:$0xff] }
 0xbb7   :  { %v4154_v31 = vpack.c.bf16 %v1191_v30, %v1190_v28 }
 0xc3f   :  { %v1056_v46 = vpop.xlane.xlu0 %1055 }
 0xc40   :  { %v1060_v49 = vmul.f32 0.03125, %v1056_v46 }
 0xc42   :  { %v1062_v52 = vadd.f32 1e-12, %v1060_v49 }
 0xc43   :  { %v1059_v53 = vpop.xlane.xlu0 %1058 }
 0xc44   :  { %4423 = vrsqrt.f32 %v1062_v52  ;;  %v1061_v55 = vmul.f32 0.03125, %v1059_v53 }
 0xc46   :  { %v1063_v57 = vadd.f32 1e-12, %v1061_v55 }
 0xc48   :  { %4425 = vrsqrt.f32 %v1063_v57 }
 0xc4e   :  { %v4424_v59 = vpop.eup %4423 }
 0xc4f   :  { %v1066_v60 = vmul.f32 %v4424_v59, %v1050_v48  ;;  %v1188_v48 = vld [vmem:[#allocation2 + $0x368] sm:$0xff] }
 0xc50   :  { %v4150_v47 = vpack.c.bf16 %v1189_v27, %v1188_v48 }
 0xc51   :  { %3630 = vmatprep.mubr.msk.f32.mxu1 %vm232_vm2, %v1066_v60 }
 0xc52   :  { %v4426_v61 = vpop.eup %4425 }
 0xc53   :  { %v1067_v19 = vmul.f32 %v4426_v61, %v1051_v26  ;;  %v4146_v26 = vpack.c.bf16 %v1187_v24, %v1186_v22 }
 0xc55   :  { %3631 = vmatmul.mubr.msk.f32.vlgmr.msra.gmra.mrb[34].mxu1 %vm232_vm2, %v1067_v19  ;;  %4147 = vmatprep.subr.bf16.mxu0 %v4146_v26 }
 0xc56   :  { %4161 = vmatpush3.bf16.msra.mxu1 %v4580_v1  ;;  %4149 = vmatpush3.bf16.msra.mxu0 %v4146_v26 }
 0xc57   :  { %4163 = vmatprep.subr.bf16.mxu1 %v4582_v3  ;;  %4151 = vmatprep.subr.bf16.mxu0 %v4150_v47 }
 0xc5a   :  { %4165 = vmatpush3.bf16.msra.mxu1 %v4582_v3  ;;  %4153 = vmatpush3.bf16.msra.mxu0 %v4150_v47 }
 0xc5b   :  { %4166 = vmatprep.subr.bf16.mxu1 %v4514_v0  ;;  %4155 = vmatprep.subr.bf16.mxu0 %v4154_v31 }
 0xc5e   :  { %4157 = vmatpush3.bf16.msra.mxu0 %v4154_v31 }
 0xc5f   :  { %4194 = vmatprep.subr.bf16.mxu0 %v4514_v0 }
 0xd28   :  { %v3632_v38 = vpop.f32.mrb[34].mxu1 }
 0xd29   :  { %v1155_v39 = vadd.f32 %v3632_v38, %v3150_v34  ;;  %v1149_v40 = vpop.f32.mrb[35].mxu1 }
 0xd2a   :  { %v1150_v42 = vadd.f32 %v3150_v34, %v1149_v40 }
 0xd2b   :  { %v1161_v43 = vmul.f32 0.044715, %v1155_v39  ;;  %v1159_v6 = vmul.f32 0.5, %v1155_v39 }
 0xd2c   :  { %v1160_v44 = vmul.f32 0.044715, %v1150_v42  ;;  %v1158_v2 = vmul.f32 0.5, %v1150_v42 }
 0xd2d   :  { %v1163_v45 = vmul.f32 %v1161_v43, %v1155_v39 }
 0xd2e   :  { %v1162_v46 = vmul.f32 %v1160_v44, %v1150_v42 }
 0xd2f   :  { %v1165_v49 = vmul.f32 %v1163_v45, %v1155_v39 }
 0xd30   :  { %v1164_v52 = vmul.f32 %v1162_v46, %v1150_v42 }
 0xd31   :  { %v1167_v53 = vadd.f32 %v1165_v49, %v1155_v39 }
 0xd32   :  { %v1166_v55 = vadd.f32 %v1164_v52, %v1150_v42 }
 0xd33   :  { %v1169_v57 = vmul.f32 0.7978846, %v1167_v53 }
 0xd34   :  { %v1168_v59 = vmul.f32 0.7978846, %v1166_v55 }
 0xd35   :  { %4427 = vtanh.f32 %v1169_v57  ;;  %v1302_v57 = vld [vmem:[#allocation2 + $0x390] sm:$0xff] }
 0xd36   :  { %4429 = vtanh.f32 %v1168_v59  ;;  %v1303_v59 = vld [vmem:[#allocation2 + $0x398] sm:$0xff] }
 0xd3f   :  { %v4428_v60 = vpop.eup %4427 }
 0xd40   :  { %v4430_v61 = vpop.eup %4429  ;;  %v1173_v19 = vadd.f32 1.0, %v4428_v60 }
 0xd41   :  { %v1172_v4 = vadd.f32 1.0, %v4430_v61  ;;  %v4171_v61 = vpack.c.bf16 %v1303_v59, %v1302_v57 }
 0xd42   :  { %v1175_v9 = vmul.f32 %v1173_v19, %v1159_v6  ;;  %v1304_v19 = vld [vmem:[#allocation2 + $0x3a0] sm:$0xff]  ;;  %v1306_v6 = vld [vmem:[#allocation2 + $0x3b0] sm:$0xff] }
 0xd43   :  { %v1174_v7 = vmul.f32 %v1172_v4, %v1158_v2  ;;  %v1305_v2 = vld [vmem:[#allocation2 + $0x3a8] sm:$0xff] }
 0xd44   :  { %v4174_v4 = vpack.c.bf16 %v1305_v2, %v1304_v19 }
 0xd45   :  { %3665 = vmatprep.mubr.f32.mxu0 %v1174_v7  ;;  %v1307_v7 = vld [vmem:[#allocation2 + $0x3b8] sm:$0xff] }
 0xd46   :  { %3666 = vmatmul.mubr.f32.vlgmr.msra.gmra.mrb[16].mxu0 %v1175_v9  ;;  %v4177_v9 = vpack.c.bf16 %v1307_v7, %v1306_v6  ;;  %v1322_v7 = vld [vmem:[#allocation2 + $0x430] sm:$0xff] }
 0xd47   :  { %3755 = vmatprep.mubr.msk.f32.mxu0 %vm4515_vm4, %v4516_v14 }
 0xe19   :  { %v3667_v10 = vpop.f32.mrb[16].mxu0 }
 0xe1a   :  { %v1268_v12 = vadd.f32 %v3667_v10, %v4761_v15  ;;  %v1258_v16 = vpop.f32.mrb[17].mxu0  ;;  %v1309_v10 = vld [vmem:[#allocation2 + $0x3c8] sm:$0xff] }
 0xe1b   :  { %v1267_v18 = vadd.f32 %v1258_v16, %v4764_v35 }
 0xe1c   :  { %v4786_v20 = vadd.f32 %v3153_v11, %v1268_v12  ;;  %v1311_v12 = vld [vmem:[#allocation2 + $0x3d8] sm:$0xff] }
 0xe1d   :  { %v4788_v22 = vadd.f32 %v3153_v11, %v1267_v18  ;;  %v1313_v18 = vld [vmem:[#allocation2 + $0x3e8] sm:$0xff] }
 0xe1e   :  { %v1279_v23 = vsel %vm236_vm3, %v4786_v20, 0.0 }
 0xe1f   :  { %1280 = vadd.xlane.f32.xlu1 %v1279_v23  ;;  %v1276_v24 = vsel %vm232_vm2, %v4788_v22, 0.0 }
 0xe20   :  { %1277 = vadd.xlane.f32.xlu0 %v1276_v24  ;;  %v1315_v24 = vld [vmem:[#allocation2 + $0x3f8] sm:$0xff] }
 0xeac   :  { %v1281_v26 = vpop.xlane.xlu1 %1280 }
 0xead   :  { %v1283_v48 = vmul.f32 0.03125, %v1281_v26  ;;  %v1278_v27 = vpop.xlane.xlu0 %1277 }
 0xeae   :  { %v1282_v47 = vmul.f32 0.03125, %v1278_v27  ;;  %v1317_v27 = vld [vmem:[#allocation2 + $0x408] sm:$0xff] }
 0xeaf   :  { %v1285_v15 = vsub.f32 %v4786_v20, %v1283_v48  ;;  %v1316_v48 = vld [vmem:[#allocation2 + $0x400] sm:$0xff] }
 0xeb0   :  { %v1284_v35 = vsub.f32 %v4788_v22, %v1282_v47  ;;  %v4192_v47 = vpack.c.bf16 %v1317_v27, %v1316_v48 }
 0xeb1   :  { %v1287_v28 = vmul.f32 %v1285_v15, %v1285_v15 }
 0xeb2   :  { %v1286_v30 = vmul.f32 %v1284_v35, %v1284_v35 }
 0xeb3   :  { %v1291_v31 = vsel %vm236_vm3, %v1287_v28, 0.0 }
 0xeb4   :  { %1292 = vadd.xlane.f32.xlu1 %v1291_v31  ;;  %v1288_v34 = vsel %vm232_vm2, %v1286_v30, 0.0 }
 0xeb5   :  { %1289 = vadd.xlane.f32.xlu0 %v1288_v34 }
 0xf41   :  { %v1293_v38 = vpop.xlane.xlu1 %1292 }
 0xf42   :  { %v1295_v39 = vmul.f32 0.03125, %v1293_v38  ;;  %v1290_v40 = vpop.xlane.xlu0 %1289 }
 0xf43   :  { %v1294_v42 = vmul.f32 0.03125, %v1290_v40 }
 0xf44   :  { %v1297_v43 = vadd.f32 1e-12, %v1295_v39 }
 0xf45   :  { %v1296_v44 = vadd.f32 1e-12, %v1294_v42 }
 0xf46   :  { %4431 = vrsqrt.f32 %v1297_v43 }
 0xf47   :  { %4433 = vrsqrt.f32 %v1296_v44 }
 0xf50   :  { %v4432_v45 = vpop.eup %4431 }
 0xf51   :  { %v4434_v46 = vpop.eup %4433  ;;  %v1301_v52 = vmul.f32 %v4432_v45, %v1285_v15 }
 0xf52   :  { %v1300_v49 = vmul.f32 %v4434_v46, %v1284_v35  ;;  %v1318_v46 = vld [vmem:[#allocation2 + $0x410] sm:$0xff] }
 0xf54   :  { %3676 = vmatprep.mubr.msk.f32.mxu1 %vm232_vm2, %v1300_v49  ;;  %v1319_v49 = vld [vmem:[#allocation2 + $0x418] sm:$0xff] }
 0xf55   :  { %3677 = vmatmul.mubr.msk.f32.vlgmr.msra.gmra.mrb[36].mxu1 %vm232_vm2, %v1301_v52 }
 0xf56   :  { %3683 = vmatprep.mubr.msk.f32.mxu1 %vm4515_vm4, %v4516_v14 }
0x1028   :  { %v3678_v53 = vpop.f32.mrb[36].mxu1 }
0x1029   :  { %v1400_v55 = vpop.f32.mrb[37].mxu1 }
0x102a   :  { %v4167_v60 = vpack.c.bf16 %v3678_v53, %v1400_v55 }
0x102c   :  { %4169 = vmatpush3.bf16.msk.msra.mxu1 %vm4595_vm7, %v4167_v60  ;;  %v1320_v60 = vld [vmem:[#allocation2 + $0x420] sm:$0xff] }
0x102d   :  { %4170 = vmatprep.subr.bf16.mxu1 %v4514_v0 }
0x102f   :  { %3684 = vmatmul.mubr.msk.f32.vlgmr.msra.gmra.mrb[38].mxu1 %vm368_vm8, %v4601_v21  ;;  %v1308_v21 = vld [vmem:[#allocation2 + $0x3c0] sm:$0xff] }
0x1030   :  { %3686 = vmatprep.mubr.msk.f32.mxu1 %vm4515_vm4, %v4516_v14  ;;  %4172 = vmatpush3.bf16.msra.mxu1 %v4171_v61  ;;  %v4180_v11 = vpack.c.bf16 %v1309_v10, %v1308_v21  ;;  %v1321_v61 = vld [vmem:[#allocation2 + $0x428] sm:$0xff] }
0x1031   :  { %4173 = vmatprep.subr.bf16.mxu1 %v4514_v0 }
0x1033   :  { %3687 = vmatmul.mubr.msk.f32.gmra.mrb[40].mxu1 %vm368_vm8, %v4608_v25  ;;  %v1310_v25 = vld [vmem:[#allocation2 + $0x3d0] sm:$0xff] }
0x1034   :  { %3689 = vmatprep.mubr.msk.f32.mxu1 %vm4515_vm4, %v4516_v14  ;;  %4175 = vmatpush3.bf16.msra.mxu1 %v4174_v4  ;;  %v4183_v16 = vpack.c.bf16 %v1311_v12, %v1310_v25 }
0x1035   :  { %4176 = vmatprep.subr.bf16.mxu1 %v4514_v0 }
0x1037   :  { %3690 = vmatmul.mubr.msk.f32.gmra.mrb[42].mxu1 %vm368_vm8, %v4615_v29  ;;  %v1312_v29 = vld [vmem:[#allocation2 + $0x3e0] sm:$0xff] }
0x1038   :  { %3692 = vmatprep.mubr.msk.f32.mxu1 %vm4515_vm4, %v4516_v14  ;;  %4178 = vmatpush3.bf16.msra.mxu1 %v4177_v9  ;;  %v4186_v23 = vpack.c.bf16 %v1313_v18, %v1312_v29 }
0x1039   :  { %4179 = vmatprep.subr.bf16.mxu1 %v4514_v0 }
0x103b   :  { %3693 = vmatmul.mubr.msk.f32.gmra.mrb[44].mxu1 %vm368_vm8, %v4622_v33  ;;  %v1314_v33 = vld [vmem:[#allocation2 + $0x3f0] sm:$0xff] }
0x103c   :  { %3695 = vmatprep.mubr.msk.f32.mxu1 %vm4515_vm4, %v4516_v14  ;;  %4181 = vmatpush3.bf16.msra.mxu1 %v4180_v11  ;;  %v4189_v26 = vpack.c.bf16 %v1315_v24, %v1314_v33 }
0x103d   :  { %4182 = vmatprep.subr.bf16.mxu1 %v4514_v0 }
0x103f   :  { %3696 = vmatmul.mubr.msk.f32.gmra.mrb[46].mxu1 %vm368_vm8, %v4629_v37 }
0x1040   :  { %4184 = vmatpush3.bf16.msra.mxu1 %v4183_v16  ;;  %3730 = vmatprep.mubr.msk.f32.mxu1 %vm4515_vm4, %v4516_v14 }
0x1041   :  { %4185 = vmatprep.subr.bf16.mxu1 %v4514_v0 }
0x1044   :  { %4187 = vmatpush3.bf16.msra.mxu1 %v4186_v23 }
0x1045   :  { %4188 = vmatprep.subr.bf16.mxu1 %v4514_v0 }
0x1048   :  { %4190 = vmatpush3.bf16.msra.mxu1 %v4189_v26 }
0x1049   :  { %4191 = vmatprep.subr.bf16.mxu1 %v4514_v0 }
0x104c   :  { %4193 = vmatpush3.bf16.msra.mxu1 %v4192_v47 }
0x104d   :  { %4202 = vmatprep.subr.bf16.mxu1 %v4514_v0 }
0x1102   :  { %v1478_v37 = vpop.f32.mrb[38].mxu1 }
0x1103   :  { %v1502_v15 = vmul.f32 %v1478_v37, %v4640_v50  ;;  %v3685_v35 = vpop.f32.mrb[39].mxu1 }
0x1105   :  { %3731 = vmatmul.mubr.f32.vlgmr.msra.gmra.mrb[48].mxu1 %v1502_v15 }
0x1106   :  { %v1483_v28 = vpop.f32.mrb[40].mxu1  ;;  %3733 = vmatprep.mubr.msk.f32.mxu1 %vm4515_vm4, %v4516_v14 }
0x1107   :  { %v1503_v30 = vmul.f32 %v1483_v28, %v4643_v54  ;;  %v3688_v31 = vpop.f32.mrb[41].mxu1 }
0x1109   :  { %3734 = vmatmul.mubr.f32.gmra.mrb[50].mxu1 %v1503_v30 }
0x110a   :  { %v1488_v34 = vpop.f32.mrb[42].mxu1  ;;  %3736 = vmatprep.mubr.msk.f32.mxu1 %vm4515_vm4, %v4516_v14 }
0x110b   :  { %v1504_v38 = vmul.f32 %v1488_v34, %v4648_v58  ;;  %v3691_v39 = vpop.f32.mrb[43].mxu1 }
0x110d   :  { %3737 = vmatmul.mubr.f32.gmra.mrb[52].mxu1 %v1504_v38 }
0x110e   :  { %v1493_v40 = vpop.f32.mrb[44].mxu1  ;;  %3739 = vmatprep.mubr.msk.f32.mxu1 %vm4515_vm4, %v4516_v14 }
0x110f   :  { %v1505_v50 = vmul.f32 %v1493_v40, %v4653_v62  ;;  %v3694_v42 = vpop.f32.mrb[45].mxu1 }
0x1111   :  { %3740 = vmatmul.mubr.f32.gmra.mrb[54].mxu1 %v1505_v50 }
0x1112   :  { %v1498_v43 = vpop.f32.mrb[46].mxu1  ;;  %3742 = vmatprep.mubr.msk.f32.mxu1 %vm4515_vm4, %v4516_v14 }
0x1113   :  { %v1506_v54 = vmul.f32 %v1498_v43, %v4658_v5  ;;  %v3697_v44 = vpop.f32.mrb[47].mxu1 }
0x1115   :  { %3743 = vmatmul.mubr.f32.gmra.mrb[56].mxu1 %v1506_v54 }
0x1116   :  { %3780 = vmatprep.mubr.msk.f32.mxu1 %vm4515_vm4, %v4516_v14 }
0x11d8   :  { %v1573_v58 = vpop.f32.mrb[48].mxu1 }
0x11d9   :  { %v3732_v45 = vpop.f32.mrb[49].mxu1  ;;  %v1574_v53 = vadd.f32 %v1573_v58, %v1318_v46 }
0x11dc   :  { %v1578_v52 = vpop.f32.mrb[50].mxu1 }
0x11dd   :  { %v1579_v62 = vadd.f32 %v1578_v52, %v1319_v49  ;;  %v3735_v55 = vpop.f32.mrb[51].mxu1 }
0x11df   :  { %v4848_v57 = vpack.i.bf16 %v1579_v62, %v1574_v53 }
0x11e0   :  { %v1583_v59 = vpop.f32.mrb[52].mxu1 }
0x11e1   :  { %4360 = vrot.lane.b32.xlu0 %v4848_v57, %s4518_s0  ;;  %v3738_v5 = vpop.f32.mrb[53].mxu1  ;;  %v1584_v2 = vadd.f32 %v1583_v59, %v1320_v60 }
0x11e4   :  { %v1588_v19 = vpop.f32.mrb[54].mxu1 }
0x11e5   :  { %v1589_v4 = vadd.f32 %v1588_v19, %v1321_v61  ;;  %v3741_v6 = vpop.f32.mrb[55].mxu1 }
0x11e7   :  { %v4852_v9 = vpack.i.bf16 %v1589_v4, %v1584_v2 }
0x11e8   :  { %v1593_v21 = vpop.f32.mrb[56].mxu1 }
0x11e9   :  { %4365 = vrot.lane.b32.xlu1 %v4852_v9, %s4518_s0  ;;  %v4856_v10 = vadd.f32 %v1593_v21, %v1322_v7  ;;  %v3744_v11 = vpop.f32.mrb[57].mxu1 }
0x11ed   :  { %1610 = vrot.lane.b32.xlu1 %v4856_v10, %s4518_s0 }
0x1253   :  { %v4361_v25 = vpop.permute.xlu0 %4360 }
0x1254   :  { %v4363_v12 = vunpack.i.h.bf16 %v4361_v25  ;;  %v4362_v16 = vunpack.i.l.bf16 %v4361_v25 }
0x1256   :  { %v4195_v29 = vpack.c.bf16 %v4363_v12, %v4362_v16 }
0x1258   :  { %4197 = vmatpush3.bf16.xpose.msk.msra.mxu0 %vm4679_vm9, %v4195_v29 }
0x1259   :  { %4198 = vmatprep.subr.bf16.mxu0 %v4514_v0 }
0x125b   :  { %v4366_v18 = vpop.permute.xlu1 %4365 }
0x125c   :  { %v4368_v23 = vunpack.i.h.bf16 %v4366_v18  ;;  %v4367_v33 = vunpack.i.l.bf16 %v4366_v18 }
0x125e   :  { %v4199_v24 = vpack.c.bf16 %v4368_v23, %v4367_v33 }
0x125f   :  { %v1611_v26 = vpop.permute.xlu1 %1610 }
0x1260   :  { %4201 = vmatpush3.bf16.xpose.msk.msra.mxu0 %vm4679_vm9, %v4199_v24 }
0x1261   :  { %3753 = vmatprep.subr.mxu0 %v4516_v14 }
0x1268   :  { %3754 = vmatpush3.xpose.msk.msra.mxu0 %vm133_vm1, %v1611_v26 }
0x126b   :  { %3756 = vmatmul.mubr.msk.f32.vlgmr.msra.gmra.mrb[18].mxu0 %vm133_vm1, %v1574_v53 }
0x126c   :  { %3758 = vmatprep.mubr.msk.f32.mxu0 %vm4515_vm4, %v4516_v14 }
0x126f   :  { %3759 = vmatmul.mubr.msk.f32.gmra.mrb[20].mxu0 %vm133_vm1, %v1579_v62 }
0x1270   :  { %3761 = vmatprep.mubr.msk.f32.mxu0 %vm4515_vm4, %v4516_v14 }
0x1273   :  { %3762 = vmatmul.mubr.msk.f32.gmra.mrb[22].mxu0 %vm133_vm1, %v1584_v2 }
0x1274   :  { %3764 = vmatprep.mubr.msk.f32.mxu0 %vm4515_vm4, %v4516_v14 }
0x1277   :  { %3765 = vmatmul.mubr.msk.f32.gmra.mrb[24].mxu0 %vm133_vm1, %v1589_v4 }
0x1278   :  { %3767 = vmatprep.mubr.msk.f32.mxu0 %vm4515_vm4, %v4516_v14 }
0x127b   :  { %3768 = vmatmul.mubr.msk.f32.gmra.mrb[26].mxu0 %vm133_vm1, %v4856_v10 }
0x127c   :  { %3805 = vmatprep.mubr.msk.f32.mxu0 %vm698_vm10, %v4750_v36 }
0x133e   :  { %v1698_v48 = vpop.f32.mrb[18].mxu0 }
0x133f   :  { %v1699_v27 = vadd.f32 %v1698_v48, %v4704_v51  ;;  %v3757_v47 = vpop.f32.mrb[19].mxu0 }
0x1341   :  { %v1722_v37 = vsel %vm698_vm10, %v1699_v27, -inf }
0x1342   :  { %1723 = vmax.xlane.f32.xlu1 %v1722_v37  ;;  %v1703_v15 = vpop.f32.mrb[20].mxu0 }
0x1343   :  { %v1704_v35 = vadd.f32 %v1703_v15, %v4707_v56  ;;  %v3760_v28 = vpop.f32.mrb[21].mxu0 }
0x1345   :  { %v1725_v30 = vsel %vm698_vm10, %v1704_v35, -inf }
0x1346   :  { %1726 = vmax.xlane.f32.xlu0 %v1725_v30  ;;  %v1708_v31 = vpop.f32.mrb[22].mxu0 }
0x1347   :  { %v1709_v34 = vadd.f32 %v1708_v31, %v4711_v63  ;;  %v3763_v38 = vpop.f32.mrb[23].mxu0 }
0x1349   :  { %v1728_v36 = vsel %vm698_vm10, %v1709_v34, -inf }
0x134a   :  { %1729 = vmax.xlane.f32.xlu0 %v1728_v36  ;;  %v1713_v39 = vpop.f32.mrb[24].mxu0 }
0x134b   :  { %v1714_v51 = vadd.f32 %v1713_v39, %v4715_v8  ;;  %v3766_v40 = vpop.f32.mrb[25].mxu0 }
0x134d   :  { %v1731_v50 = vsel %vm698_vm10, %v1714_v51, -inf }
0x134e   :  { %1732 = vmax.xlane.f32.xlu0 %v1731_v50  ;;  %v1718_v42 = vpop.f32.mrb[26].mxu0 }
0x134f   :  { %v1719_v56 = vadd.f32 %v1718_v42, %v4719_v13  ;;  %v3769_v43 = vpop.f32.mrb[27].mxu0 }
0x1351   :  { %v1734_v54 = vsel %vm698_vm10, %v1719_v56, -inf }
0x1352   :  { %1735 = vmax.xlane.f32.xlu1 %v1734_v54 }
0x13cf   :  { %v1724_v44 = vpop.xlane.xlu1 %1723 }
0x13d0   :  { %v1737_v63 = vsub.f32 %v1699_v27, %v1724_v44 }
0x13d2   :  { %v1742_v58 = vmul.f32 1.442695, %v1737_v63 }
0x13d3   :  { %v1727_v45 = vpop.xlane.xlu0 %1726 }
0x13d4   :  { %4435 = vpow2.f32 %v1742_v58  ;;  %v1738_v46 = vsub.f32 %v1704_v35, %v1727_v45 }
0x13d6   :  { %v1744_v49 = vmul.f32 1.442695, %v1738_v46  ;;  %v1323_v46 = vld [vmem:[#allocation2 + $0x438] sm:$0xff] }
0x13d7   :  { %v1730_v52 = vpop.xlane.xlu0 %1729 }
0x13d8   :  { %4437 = vpow2.f32 %v1744_v49  ;;  %v1739_v8 = vsub.f32 %v1709_v34, %v1730_v52  ;;  %v1324_v49 = vld [vmem:[#allocation2 + $0x440] sm:$0xff] }
0x13da   :  { %v1746_v53 = vmul.f32 1.442695, %v1739_v8  ;;  %v1325_v8 = vld [vmem:[#allocation2 + $0x448] sm:$0xff] }
0x13db   :  { %v1733_v61 = vpop.xlane.xlu0 %1732 }
0x13dc   :  { %4439 = vpow2.f32 %v1746_v53  ;;  %v1740_v19 = vsub.f32 %v1714_v51, %v1733_v61  ;;  %v1326_v53 = vld [vmem:[#allocation2 + $0x450] sm:$0xff] }
0x13de   :  { %v4436_v62 = vpop.eup %4435  ;;  %v1748_v4 = vmul.f32 1.442695, %v1740_v19 }
0x13df   :  { %v1752_v55 = vsel %vm698_vm10, %v4436_v62, 0.0  ;;  %v1736_v2 = vpop.xlane.xlu1 %1735 }
0x13e0   :  { %1753 = vadd.xlane.f32.xlu0 %v1752_v55  ;;  %v1741_v6 = vsub.f32 %v1719_v56, %v1736_v2  ;;  %4441 = vpow2.f32 %v1748_v4  ;;  %v4216_v55 = vpack.c.bf16 %v1324_v49, %v1323_v46  ;;  %v2203_v46 = vld [vmem:[#allocation2 + $0x4d8] sm:$0xff]  ;;  %v2204_v49 = vld [vmem:[#allocation2 + $0x4e0] sm:$0xff] }
0x13e2   :  { %v4438_v13 = vpop.eup %4437  ;;  %v1750_v7 = vmul.f32 1.442695, %v1741_v6 }
0x13e3   :  { %v1755_v59 = vsel %vm698_vm10, %v4438_v13, 0.0 }
0x13e4   :  { %1756 = vadd.xlane.f32.xlu1 %v1755_v59  ;;  %4443 = vpow2.f32 %v1750_v7 }
0x13e6   :  { %v4440_v5 = vpop.eup %4439 }
0x13e7   :  { %v1758_v60 = vsel %vm698_vm10, %v4440_v5, 0.0 }
0x13e8   :  { %1759 = vadd.xlane.f32.xlu0 %v1758_v60  ;;  %v3179_v60 = vld [vmem:[#allocation2 + $0x458] ss:$0 sm:$0xff] }
0x13ea   :  { %v4442_v21 = vpop.eup %4441 }
0x13eb   :  { %v1761_v11 = vsel %vm698_vm10, %v4442_v21, 0.0 }
0x13ee   :  { %v4444_v25 = vpop.eup %4443 }
0x13ef   :  { %v1764_v12 = vsel %vm698_vm10, %v4444_v25, 0.0 }
0x13f5   :  { %4375 = vrot.lane.b32.xlu1 %v4852_v9, %s4519_s26 }
0x13fe   :  { %4370 = vrot.lane.b32.xlu0 %v4848_v57, %s4519_s26 }
0x1419   :  { %1762 = vadd.xlane.f32.xlu1 %v1761_v11 }
0x141d   :  { %1765 = vadd.xlane.f32.xlu1 %v1764_v12 }
0x142e   :  { %1785 = vrot.lane.b32.xlu1 %v4856_v10, %s4519_s26 }
0x146d   :  { %v1754_v57 = vpop.xlane.xlu0 %1753 }
0x146e   :  { %4445 = vrcp.f32 %v1754_v57 }
0x1471   :  { %v1757_v9 = vpop.xlane.xlu1 %1756 }
0x1472   :  { %4447 = vrcp.f32 %v1757_v9 }
0x1475   :  { %v1760_v16 = vpop.xlane.xlu0 %1759  ;;  %v4376_v29 = vpop.permute.xlu1 %4375 }
0x1476   :  { %v4378_v24 = vunpack.i.h.bf16 %v4376_v29  ;;  %v4377_v26 = vunpack.i.l.bf16 %v4376_v29  ;;  %4449 = vrcp.f32 %v1760_v16 }
0x1478   :  { %v4206_v27 = vpack.c.bf16 %v4378_v24, %v4377_v26  ;;  %v4446_v37 = vpop.eup %4445  ;;  %v2087_v26 = vld [vmem:[#allocation2 + $0x470] sm:$0xff] }
0x1479   :  { %v4371_v18 = vpop.permute.xlu0 %4370  ;;  %v1772_v15 = vmul.f32 %v4446_v37, %v4436_v62 }
0x147a   :  { %v4373_v23 = vunpack.i.h.bf16 %v4371_v18  ;;  %v4372_v33 = vunpack.i.l.bf16 %v4371_v18 }
0x147c   :  { %v4203_v48 = vpack.c.bf16 %v4373_v23, %v4372_v33  ;;  %v4448_v28 = vpop.eup %4447  ;;  %v2085_v23 = vld [vmem:[#allocation2 + $0x460] sm:$0xff]  ;;  %v2086_v33 = vld [vmem:[#allocation2 + $0x468] sm:$0xff] }
0x147d   :  { %v1773_v30 = vmul.f32 %v4448_v28, %v4438_v13  ;;  %v4220_v13 = vpack.c.bf16 %v1326_v53, %v1325_v8  ;;  %v4224_v24 = vpack.c.bf16 %v2086_v33, %v2085_v23  ;;  %v2205_v8 = vld [vmem:[#allocation2 + $0x4e8] sm:$0xff]  ;;  %v2206_v53 = vld [vmem:[#allocation2 + $0x4f0] sm:$0xff] }
0x147e   :  { %4204 = vmatpush3.bf16.msra.mxu1 %v4203_v48  ;;  %v2088_v48 = vld [vmem:[#allocation2 + $0x478] sm:$0xff] }
0x147f   :  { %4205 = vmatprep.subr.bf16.mxu1 %v4514_v0 }
0x1480   :  { %v4450_v31 = vpop.eup %4449 }
0x1481   :  { %v1774_v34 = vmul.f32 %v4450_v31, %v4440_v5 }
0x1482   :  { %4207 = vmatpush3.bf16.msra.mxu1 %v4206_v27  ;;  %v4228_v27 = vpack.c.bf16 %v2088_v48, %v2087_v26 }
0x1483   :  { %3778 = vmatprep.subr.mxu1 %v4516_v14 }
0x14a6   :  { %v1763_v10 = vpop.xlane.xlu1 %1762 }
0x14a7   :  { %4451 = vrcp.f32 %v1763_v10  ;;  %v2193_v10 = vld [vmem:[#allocation2 + $0x488] sm:$0xff] }
0x14aa   :  { %v1766_v47 = vpop.xlane.xlu1 %1765 }
0x14ab   :  { %4453 = vrcp.f32 %v1766_v47  ;;  %v2194_v47 = vld [vmem:[#allocation2 + $0x490] sm:$0xff] }
0x14ac   :  { %v4232_v37 = vpack.c.bf16 %v2194_v47, %v2193_v10  ;;  %v3185_v10 = vld [vmem:[#allocation2 + $0x508] ss:$0 sm:$0xff] }
0x14ae   :  { %v1786_v35 = vpop.permute.xlu1 %1785 }
0x14af   :  { %3779 = vmatpush3.msra.mxu1 %v1786_v35 }
0x14b0   :  { %3781 = vmatmul.mubr.msk.f32.vlgmr.msra.gmra.mrb[58].mxu1 %vm698_vm10, %v1772_v15  ;;  %4225 = vmatprep.subr.bf16.mxu1 %v4224_v24 }
0x14b1   :  { %3783 = vmatprep.mubr.msk.f32.mxu1 %vm4515_vm4, %v4516_v14  ;;  %v4452_v38 = vpop.eup %4451  ;;  %4227 = vmatpush3.bf16.msra.mxu1 %v4224_v24 }
0x14b2   :  { %v1775_v36 = vmul.f32 %v4452_v38, %v4442_v21  ;;  %4229 = vmatprep.subr.bf16.mxu1 %v4228_v27 }
0x14b4   :  { %3784 = vmatmul.mubr.msk.f32.gmra.mrb[60].mxu1 %vm698_vm10, %v1773_v30 }
0x14b5   :  { %3786 = vmatprep.mubr.msk.f32.mxu1 %vm4515_vm4, %v4516_v14  ;;  %v4454_v39 = vpop.eup %4453  ;;  %4231 = vmatpush3.bf16.msra.mxu1 %v4228_v27 }
0x14b6   :  { %v1776_v51 = vmul.f32 %v4454_v39, %v4444_v25  ;;  %4265 = vmatprep.subr.bf16.mxu1 %v4580_v1 }
0x14b8   :  { %3787 = vmatmul.mubr.msk.f32.gmra.mrb[62].mxu1 %vm698_vm10, %v1774_v34 }
0x14b9   :  { %3789 = vmatprep.mubr.msk.f32.mxu1 %vm4515_vm4, %v4516_v14 }
0x14bc   :  { %3790 = vmatmul.mubr.msk.f32.gmra.mrb[64].mxu1 %vm698_vm10, %v1775_v36 }
0x14bd   :  { %3792 = vmatprep.mubr.msk.f32.mxu1 %vm4515_vm4, %v4516_v14 }
0x14c0   :  { %3793 = vmatmul.mubr.msk.f32.gmra.mrb[66].mxu1 %vm698_vm10, %v1776_v51 }
0x1583   :  { %v1873_v40 = vpop.f32.mrb[58].mxu1 }
0x1584   :  { %v3782_v50 = vpop.f32.mrb[59].mxu1 }
0x1585   :  { %v2196_v50 = vld [vmem:[#allocation2 + $0x4a0] sm:$0xff] }
0x1587   :  { %v1878_v42 = vpop.f32.mrb[60].mxu1 }
0x1588   :  { %v4208_v56 = vpack.c.bf16 %v1878_v42, %v1873_v40  ;;  %v3785_v43 = vpop.f32.mrb[61].mxu1  ;;  %v2195_v40 = vld [vmem:[#allocation2 + $0x498] sm:$0xff] }
0x1589   :  { %v4236_v42 = vpack.c.bf16 %v2196_v50, %v2195_v40  ;;  %v2198_v43 = vld [vmem:[#allocation2 + $0x4b0] sm:$0xff] }
0x158a   :  { %4209 = vmatprep.subr.bf16.mxu0 %v4208_v56 }
0x158b   :  { %v1883_v54 = vpop.f32.mrb[62].mxu1  ;;  %4211 = vmatpush3.bf16.msra.mxu0 %v4208_v56  ;;  %v2197_v56 = vld [vmem:[#allocation2 + $0x4a8] sm:$0xff] }
0x158c   :  { %v3788_v44 = vpop.f32.mrb[63].mxu1 }
0x158d   :  { %v2199_v44 = vld [vmem:[#allocation2 + $0x4b8] sm:$0xff] }
0x158f   :  { %v1888_v63 = vpop.f32.mrb[64].mxu1 }
0x1590   :  { %v4212_v58 = vpack.c.bf16 %v1888_v63, %v1883_v54  ;;  %v3791_v45 = vpop.f32.mrb[65].mxu1  ;;  %v4240_v54 = vpack.c.bf16 %v2198_v43, %v2197_v56  ;;  %v2200_v63 = vld [vmem:[#allocation2 + $0x4c0] sm:$0xff] }
0x1591   :  { %v2202_v45 = vld [vmem:[#allocation2 + $0x4d0] sm:$0xff] }
0x1592   :  { %4213 = vmatprep.subr.bf16.mxu0 %v4212_v58 }
0x1593   :  { %v1893_v52 = vpop.f32.mrb[66].mxu1  ;;  %4215 = vmatpush3.bf16.msra.mxu0 %v4212_v58  ;;  %v4244_v58 = vpack.c.bf16 %v2200_v63, %v2199_v44 }
0x1594   :  { %v3794_v62 = vpop.f32.mrb[67].mxu1  ;;  %3803 = vmatprep.subr.mxu0 %v1893_v52 }
0x1595   :  { %v4256_v62 = vpack.c.bf16 %v2206_v53, %v2205_v8  ;;  %v2336_v8 = vld [vmem:[#allocation2 + $0x510] sm:$0xff]  ;;  %v2337_v53 = vld [vmem:[#allocation2 + $0x518] sm:$0xff] }
0x1597   :  { %3804 = vmatpush3.msra.mxu0 %v1893_v52  ;;  %v4252_v52 = vpack.c.bf16 %v2204_v49, %v2203_v46 }
0x1598   :  { %3806 = vmatmul.mubr.msk.f32.vlgmr.msra.gmra.mrb[28].mxu0 %vm698_vm10, %v4754_v32  ;;  %4217 = vmatprep.subr.bf16.mxu0 %v4216_v55 }
0x1599   :  { %4219 = vmatpush3.bf16.msra.mxu0 %v4216_v55  ;;  %v2207_v55 = vld [vmem:[#allocation2 + $0x4f8] sm:$0xff] }
0x159a   :  { %4221 = vmatprep.subr.bf16.mxu0 %v4220_v13 }
0x159d   :  { %4223 = vmatpush3.bf16.msra.mxu0 %v4220_v13  ;;  %v2208_v13 = vld [vmem:[#allocation2 + $0x500] sm:$0xff] }
0x159e   :  { %4233 = vmatprep.subr.bf16.mxu0 %v4232_v37 }
0x166b   :  { %v3807_v59 = vpop.f32.mrb[28].mxu0 }
0x166c   :  { %v1963_v5 = vpop.f32.mrb[29].mxu0 }
0x166d   :  { %3816 = vmatprep.mubr.msk.f32.mxu0 %vm232_vm2, %v1963_v5  ;;  %v3182_v5 = vld [vmem:[#allocation2 + $0x480] ss:$0 sm:$0xff] }
0x166e   :  { %3817 = vmatmul.mubr.msk.f32.vlgmr.msra.gmra.mrb[30].mxu0 %vm232_vm2, %v3807_v59  ;;  %v4260_v59 = vpack.c.bf16 %v2208_v13, %v2207_v55  ;;  %v2319_v55 = vld [vmem:[#allocation2 + $0x188] sm:$0xff]  ;;  %v4277_v13 = vpack.c.bf16 %v2337_v53, %v2336_v8  ;;  %v2354_v8 = vld [vmem:[#allocation2 + $0x5a0] sm:$0xff] }
0x166f   :  { %4235 = vmatpush3.bf16.msra.mxu0 %v4232_v37  ;;  %v2355_v53 = vld [vmem:[#allocation2 + $0x5a8] sm:$0xff] }
0x1670   :  { %4237 = vmatprep.subr.bf16.mxu0 %v4236_v42 }
0x1673   :  { %4239 = vmatpush3.bf16.msra.mxu0 %v4236_v42 }
0x1674   :  { %4241 = vmatprep.subr.bf16.mxu0 %v4240_v54 }
0x1677   :  { %4243 = vmatpush3.bf16.msra.mxu0 %v4240_v54 }
0x1678   :  { %4245 = vmatprep.subr.bf16.mxu0 %v4244_v58 }
0x167b   :  { %4247 = vmatpush3.bf16.msra.mxu0 %v4244_v58 }
0x1741   :  { %v3818_v61 = vpop.f32.mrb[30].mxu0 }
0x1742   :  { %v2054_v19 = vadd.f32 %v3818_v61, %v3179_v60  ;;  %v2048_v2 = vpop.f32.mrb[31].mxu0 }
0x1743   :  { %v2049_v4 = vadd.f32 %v3179_v60, %v2048_v2 }
0x1744   :  { %v4924_v6 = vadd.f32 %v2054_v19, %v4786_v20 }
0x1745   :  { %v4927_v32 = vadd.f32 %v2049_v4, %v4788_v22 }
0x1746   :  { %v2062_v7 = vsel %vm236_vm3, %v4924_v6, 0.0 }
0x1747   :  { %2063 = vadd.xlane.f32.xlu1 %v2062_v7  ;;  %v2059_v21 = vsel %vm232_vm2, %v4927_v32, 0.0 }
0x1748   :  { %2060 = vadd.xlane.f32.xlu0 %v2059_v21 }
0x17d4   :  { %v2064_v11 = vpop.xlane.xlu1 %2063 }
0x17d5   :  { %v2066_v25 = vmul.f32 0.03125, %v2064_v11  ;;  %v2061_v12 = vpop.xlane.xlu0 %2060 }
0x17d6   :  { %v2065_v57 = vmul.f32 0.03125, %v2061_v12 }
0x17d7   :  { %v2068_v9 = vsub.f32 %v4924_v6, %v2066_v25 }
0x17d8   :  { %v2067_v20 = vsub.f32 %v4927_v32, %v2065_v57 }
0x17d9   :  { %v2070_v29 = vmul.f32 %v2068_v9, %v2068_v9 }
0x17da   :  { %v2069_v16 = vmul.f32 %v2067_v20, %v2067_v20 }
0x17db   :  { %v2074_v18 = vsel %vm236_vm3, %v2070_v29, 0.0 }
0x17dc   :  { %v2071_v22 = vsel %vm232_vm2, %v2069_v16, 0.0 }
0x17dd   :  { %2072 = vadd.xlane.f32.xlu0 %v2071_v22 }
0x17e1   :  { %2075 = vadd.xlane.f32.xlu0 %v2074_v18 }
0x186a   :  { %v2073_v15 = vpop.xlane.xlu0 %2072 }
0x186b   :  { %v2077_v35 = vmul.f32 0.03125, %v2073_v15 }
0x186d   :  { %v2079_v28 = vadd.f32 1e-12, %v2077_v35 }
0x186e   :  { %v2076_v30 = vpop.xlane.xlu0 %2075 }
0x186f   :  { %4455 = vrsqrt.f32 %v2079_v28  ;;  %v2078_v31 = vmul.f32 0.03125, %v2076_v30 }
0x1871   :  { %v2080_v34 = vadd.f32 1e-12, %v2078_v31 }
0x1873   :  { %4457 = vrsqrt.f32 %v2080_v34 }
0x1879   :  { %v4456_v38 = vpop.eup %4455 }
0x187a   :  { %v2083_v36 = vmul.f32 %v4456_v38, %v2067_v20 }
0x187c   :  { %3827 = vmatprep.mubr.msk.f32.mxu1 %vm232_vm2, %v2083_v36 }
0x187d   :  { %v4458_v39 = vpop.eup %4457 }
0x187e   :  { %v2084_v51 = vmul.f32 %v4458_v39, %v2068_v9 }
0x1880   :  { %3828 = vmatmul.mubr.msk.f32.vlgmr.msra.gmra.mrb[68].mxu1 %vm232_vm2, %v2084_v51 }
0x1881   :  { %4267 = vmatpush3.bf16.msra.mxu1 %v4580_v1  ;;  %v2201_v1 = vld [vmem:[#allocation2 + $0x4c8] sm:$0xff] }
0x1882   :  { %4269 = vmatprep.subr.bf16.mxu1 %v4582_v3 }
0x1885   :  { %4271 = vmatpush3.bf16.msra.mxu1 %v4582_v3  ;;  %v4248_v3 = vpack.c.bf16 %v2202_v45, %v2201_v1 }
0x1886   :  { %4272 = vmatprep.subr.bf16.mxu1 %v4514_v0 }
0x1887   :  { %4249 = vmatprep.subr.bf16.mxu0 %v4248_v3 }
0x1888   :  { %4251 = vmatpush3.bf16.msra.mxu0 %v4248_v3 }
0x1889   :  { %4253 = vmatprep.subr.bf16.mxu0 %v4252_v52 }
0x188c   :  { %4255 = vmatpush3.bf16.msra.mxu0 %v4252_v52 }
0x188d   :  { %4257 = vmatprep.subr.bf16.mxu0 %v4256_v62 }
0x1890   :  { %4259 = vmatpush3.bf16.msra.mxu0 %v4256_v62 }
0x1891   :  { %4261 = vmatprep.subr.bf16.mxu0 %v4260_v59 }
0x1894   :  { %4263 = vmatpush3.bf16.msra.mxu0 %v4260_v59  ;;  %v2338_v59 = vld [vmem:[#allocation2 + $0x520] sm:$0xff] }
0x1895   :  { %4300 = vmatprep.subr.bf16.mxu0 %v4514_v0 }
0x1953   :  { %v3829_v60 = vpop.f32.mrb[68].mxu1 }
0x1954   :  { %v2172_v61 = vadd.f32 %v3829_v60, %v3182_v5  ;;  %v2166_v19 = vpop.f32.mrb[69].mxu1  ;;  %v2320_v60 = vld [vmem:[#allocation2 + $0x190] sm:$0xff] }
0x1955   :  { %v2167_v2 = vadd.f32 %v3182_v5, %v2166_v19  ;;  %v2339_v5 = vld [vmem:[#allocation2 + $0x528] sm:$0xff]  ;;  %v2340_v19 = vld [vmem:[#allocation2 + $0x530] sm:$0xff] }
0x1956   :  { %v2178_v4 = vmul.f32 0.044715, %v2172_v61  ;;  %v2176_v24 = vmul.f32 0.5, %v2172_v61 }
0x1957   :  { %v2177_v7 = vmul.f32 0.044715, %v2167_v2  ;;  %v2175_v23 = vmul.f32 0.5, %v2167_v2 }
0x1958   :  { %v2180_v21 = vmul.f32 %v2178_v4, %v2172_v61 }
0x1959   :  { %v2179_v11 = vmul.f32 %v2177_v7, %v2167_v2  ;;  %v2342_v7 = vld [vmem:[#allocation2 + $0x540] sm:$0xff] }
0x195a   :  { %v2182_v25 = vmul.f32 %v2180_v21, %v2172_v61  ;;  %v2343_v21 = vld [vmem:[#allocation2 + $0x548] sm:$0xff] }
0x195b   :  { %v2181_v12 = vmul.f32 %v2179_v11, %v2167_v2  ;;  %v2322_v11 = vld [vmem:[#allocation2 + $0x1a0] sm:$0xff] }
0x195c   :  { %v2184_v57 = vadd.f32 %v2182_v25, %v2172_v61  ;;  %v4280_v61 = vpack.c.bf16 %v2339_v5, %v2338_v59  ;;  %v4286_v25 = vpack.c.bf16 %v2343_v21, %v2342_v7  ;;  %v2356_v5 = vld [vmem:[#allocation2 + $0x5b0] sm:$0xff] }
0x195d   :  { %v2183_v9 = vadd.f32 %v2181_v12, %v2167_v2  ;;  %v2341_v2 = vld [vmem:[#allocation2 + $0x538] sm:$0xff]  ;;  %v2344_v12 = vld [vmem:[#allocation2 + $0x550] sm:$0xff] }
0x195e   :  { %v2186_v20 = vmul.f32 0.7978846, %v2184_v57  ;;  %v4283_v4 = vpack.c.bf16 %v2341_v2, %v2340_v19  ;;  %v2345_v57 = vld [vmem:[#allocation2 + $0x558] sm:$0xff] }
0x195f   :  { %v2185_v16 = vmul.f32 0.7978846, %v2183_v9  ;;  %v2323_v9 = vld [vmem:[#allocation2 + $0x1a8] sm:$0xff] }
0x1960   :  { %4459 = vtanh.f32 %v2186_v20  ;;  %v4289_v20 = vpack.c.bf16 %v2345_v57, %v2344_v12 }
0x1961   :  { %4461 = vtanh.f32 %v2185_v16  ;;  %v2346_v16 = vld [vmem:[#allocation2 + $0x560] sm:$0xff] }
0x196a   :  { %v4460_v22 = vpop.eup %4459 }
0x196b   :  { %v4462_v29 = vpop.eup %4461  ;;  %v2190_v18 = vadd.f32 1.0, %v4460_v22  ;;  %v2347_v22 = vld [vmem:[#allocation2 + $0x568] sm:$0xff] }
0x196c   :  { %v2189_v33 = vadd.f32 1.0, %v4462_v29  ;;  %v4292_v29 = vpack.c.bf16 %v2347_v22, %v2346_v16 }
0x196d   :  { %v2192_v48 = vmul.f32 %v2190_v18, %v2176_v24  ;;  %v2348_v18 = vld [vmem:[#allocation2 + $0x570] sm:$0xff]  ;;  %v2350_v24 = vld [vmem:[#allocation2 + $0x580] sm:$0xff] }
0x196e   :  { %v2191_v26 = vmul.f32 %v2189_v33, %v2175_v23  ;;  %v2349_v23 = vld [vmem:[#allocation2 + $0x578] sm:$0xff] }
0x196f   :  { %v4295_v33 = vpack.c.bf16 %v2349_v23, %v2348_v18 }
0x1970   :  { %3862 = vmatprep.mubr.f32.mxu0 %v2191_v26  ;;  %v2351_v26 = vld [vmem:[#allocation2 + $0x588] sm:$0xff] }
0x1971   :  { %3863 = vmatmul.mubr.f32.vlgmr.msra.gmra.mrb[32].mxu0 %v2192_v48  ;;  %v4298_v48 = vpack.c.bf16 %v2351_v26, %v2350_v24  ;;  %v2333_v26 = vld [vmem:[#allocation2 + $0x1f8] sm:$0xff] }
0x1972   :  { %3952 = vmatprep.mubr.msk.f32.mxu0 %vm4515_vm4, %v4516_v14 }
0x1a44   :  { %v3864_v27 = vpop.f32.mrb[32].mxu0 }
0x1a45   :  { %v2285_v47 = vadd.f32 %v3864_v27, %v4924_v6  ;;  %v2275_v37 = vpop.f32.mrb[33].mxu0  ;;  %v2326_v27 = vld [vmem:[#allocation2 + $0x1c0] sm:$0xff] }
0x1a46   :  { %v2284_v15 = vadd.f32 %v2275_v37, %v4927_v32 }
0x1a47   :  { %v2292_v35 = vadd.f32 %v3185_v10, %v2285_v47 }
0x1a48   :  { %v2291_v28 = vadd.f32 %v3185_v10, %v2284_v15  ;;  %v2327_v15 = vld [vmem:[#allocation2 + $0x1c8] sm:$0xff] }
0x1a49   :  { %v2296_v30 = vsel %vm236_vm3, %v2292_v35, 0.0 }
0x1a4a   :  { %2297 = vadd.xlane.f32.xlu1 %v2296_v30  ;;  %v2293_v31 = vsel %vm232_vm2, %v2291_v28, 0.0 }
0x1a4b   :  { %2294 = vadd.xlane.f32.xlu0 %v2293_v31  ;;  %v2328_v31 = vld [vmem:[#allocation2 + $0x1d0] sm:$0xff] }
0x1ad7   :  { %v2298_v34 = vpop.xlane.xlu1 %2297 }
0x1ad8   :  { %v2300_v38 = vmul.f32 0.03125, %v2298_v34  ;;  %v2295_v36 = vpop.xlane.xlu0 %2294 }
0x1ad9   :  { %v2299_v39 = vmul.f32 0.03125, %v2295_v36 }
0x1ada   :  { %v2302_v51 = vsub.f32 %v2292_v35, %v2300_v38 }
0x1adb   :  { %v2301_v40 = vsub.f32 %v2291_v28, %v2299_v39  ;;  %v2329_v39 = vld [vmem:[#allocation2 + $0x1d8] sm:$0xff] }
0x1adc   :  { %v2304_v50 = vmul.f32 %v2302_v51, %v2302_v51 }
0x1add   :  { %v2303_v42 = vmul.f32 %v2301_v40, %v2301_v40 }
0x1ade   :  { %v2308_v6 = vsel %vm236_vm3, %v2304_v50, 0.0 }
0x1adf   :  { %2309 = vadd.xlane.f32.xlu1 %v2308_v6  ;;  %v2305_v32 = vsel %vm232_vm2, %v2303_v42, 0.0  ;;  %v2330_v42 = vld [vmem:[#allocation2 + $0x1e0] sm:$0xff] }
0x1ae0   :  { %2306 = vadd.xlane.f32.xlu0 %v2305_v32 }
0x1b6c   :  { %v2310_v56 = vpop.xlane.xlu1 %2309 }
0x1b6d   :  { %v2312_v43 = vmul.f32 0.03125, %v2310_v56  ;;  %v2307_v54 = vpop.xlane.xlu0 %2306 }
0x1b6e   :  { %v2311_v44 = vmul.f32 0.03125, %v2307_v54 }
0x1b6f   :  { %v2314_v63 = vadd.f32 1e-12, %v2312_v43 }
0x1b70   :  { %v2313_v58 = vadd.f32 1e-12, %v2311_v44  ;;  %v2352_v44 = vld [vmem:[#allocation2 + $0x590] sm:$0xff] }
0x1b71   :  { %4463 = vrsqrt.f32 %v2314_v63  ;;  %v2353_v63 = vld [vmem:[#allocation2 + $0x598] sm:$0xff] }
0x1b72   :  { %4465 = vrsqrt.f32 %v2313_v58 }
0x1b7b   :  { %v4464_v1 = vpop.eup %4463 }
0x1b7c   :  { %v4466_v45 = vpop.eup %4465  ;;  %v2318_v3 = vmul.f32 %v4464_v1, %v2302_v51 }
0x1b7d   :  { %v2317_v46 = vmul.f32 %v4466_v45, %v2301_v40 }
0x1b7f   :  { %3873 = vmatprep.mubr.msk.f32.mxu1 %vm232_vm2, %v2317_v46 }
0x1b80   :  { %3874 = vmatmul.mubr.msk.f32.vlgmr.msra.gmra.mrb[70].mxu1 %vm232_vm2, %v2318_v3 }
0x1b81   :  { %3880 = vmatprep.mubr.msk.f32.mxu1 %vm4515_vm4, %v4516_v14 }
0x1c53   :  { %v3875_v49 = vpop.f32.mrb[70].mxu1 }
0x1c54   :  { %v2434_v52 = vpop.f32.mrb[71].mxu1 }
0x1c55   :  { %v4273_v62 = vpack.c.bf16 %v3875_v49, %v2434_v52 }
0x1c57   :  { %4275 = vmatpush3.bf16.msk.msra.mxu1 %vm4595_vm7, %v4273_v62 }
0x1c58   :  { %4276 = vmatprep.subr.bf16.mxu1 %v4514_v0 }
0x1c5a   :  { %3881 = vmatmul.mubr.msk.f32.vlgmr.msra.gmra.mrb[72].mxu1 %vm368_vm8, %v2319_v55 }
0x1c5b   :  { %3883 = vmatprep.mubr.msk.f32.mxu1 %vm4515_vm4, %v4516_v14  ;;  %4278 = vmatpush3.bf16.msra.mxu1 %v4277_v13 }
0x1c5c   :  { %4279 = vmatprep.subr.bf16.mxu1 %v4514_v0 }
0x1c5e   :  { %3884 = vmatmul.mubr.msk.f32.gmra.mrb[74].mxu1 %vm368_vm8, %v2320_v60 }
0x1c5f   :  { %3886 = vmatprep.mubr.msk.f32.mxu1 %vm4515_vm4, %v4516_v14  ;;  %4281 = vmatpush3.bf16.msra.mxu1 %v4280_v61 }
0x1c60   :  { %4282 = vmatprep.subr.bf16.mxu1 %v4514_v0 }
0x1c62   :  { %3887 = vmatmul.mubr.msk.f32.gmra.mrb[76].mxu1 %vm368_vm8, %v2321_v17 }
0x1c63   :  { %3889 = vmatprep.mubr.msk.f32.mxu1 %vm4515_vm4, %v4516_v14  ;;  %4284 = vmatpush3.bf16.msra.mxu1 %v4283_v4 }
0x1c64   :  { %4285 = vmatprep.subr.bf16.mxu1 %v4514_v0 }
0x1c66   :  { %3890 = vmatmul.mubr.msk.f32.gmra.mrb[78].mxu1 %vm368_vm8, %v2322_v11 }
0x1c67   :  { %3892 = vmatprep.mubr.msk.f32.mxu1 %vm4515_vm4, %v4516_v14  ;;  %4287 = vmatpush3.bf16.msra.mxu1 %v4286_v25 }
0x1c68   :  { %4288 = vmatprep.subr.bf16.mxu1 %v4514_v0 }
0x1c6a   :  { %3893 = vmatmul.mubr.msk.f32.gmra.mrb[80].mxu1 %vm368_vm8, %v2323_v9 }
0x1c6b   :  { %4290 = vmatpush3.bf16.msra.mxu1 %v4289_v20  ;;  %3927 = vmatprep.mubr.msk.f32.mxu1 %vm4515_vm4, %v4516_v14 }
0x1c6c   :  { %4291 = vmatprep.subr.bf16.mxu1 %v4514_v0 }
0x1c6f   :  { %4293 = vmatpush3.bf16.msra.mxu1 %v4292_v29  ;;  %v2332_v29 = vld [vmem:[#allocation2 + $0x1f0] sm:$0xff] }
0x1c70   :  { %4294 = vmatprep.subr.bf16.mxu1 %v4514_v0 }
0x1c73   :  { %4296 = vmatpush3.bf16.msra.mxu1 %v4295_v33 }
0x1c74   :  { %4297 = vmatprep.subr.bf16.mxu1 %v4514_v0 }
0x1c77   :  { %4299 = vmatpush3.bf16.msra.mxu1 %v4298_v48 }
0x1c78   :  { %4308 = vmatprep.subr.bf16.mxu1 %v4514_v0 }
0x1d2d   :  { %v2527_v10 = vpop.f32.mrb[72].mxu1 }
0x1d2e   :  { %v2551_v47 = vmul.f32 %v2527_v10, %v2326_v27  ;;  %v3882_v37 = vpop.f32.mrb[73].mxu1 }
0x1d2f   :  { %v2334_v37 = vld [vmem:[#allocation2 + $0x200] sm:$0xff] }
0x1d30   :  { %3928 = vmatmul.mubr.f32.vlgmr.msra.gmra.mrb[82].mxu1 %v2551_v47 }
0x1d31   :  { %v2532_v35 = vpop.f32.mrb[74].mxu1  ;;  %3930 = vmatprep.mubr.msk.f32.mxu1 %vm4515_vm4, %v4516_v14 }
0x1d32   :  { %v2552_v28 = vmul.f32 %v2532_v35, %v2327_v15  ;;  %v3885_v30 = vpop.f32.mrb[75].mxu1 }
0x1d34   :  { %3931 = vmatmul.mubr.f32.gmra.mrb[84].mxu1 %v2552_v28 }
0x1d35   :  { %v2537_v34 = vpop.f32.mrb[76].mxu1  ;;  %3933 = vmatprep.mubr.msk.f32.mxu1 %vm4515_vm4, %v4516_v14 }
0x1d36   :  { %v2553_v38 = vmul.f32 %v2537_v34, %v2328_v31  ;;  %v3888_v36 = vpop.f32.mrb[77].mxu1  ;;  %v2335_v31 = vld [vmem:[#allocation2 + $0x208] sm:$0xff] }
0x1d38   :  { %3934 = vmatmul.mubr.f32.gmra.mrb[86].mxu1 %v2553_v38 }
0x1d39   :  { %v2542_v51 = vpop.f32.mrb[78].mxu1  ;;  %3936 = vmatprep.mubr.msk.f32.mxu1 %vm4515_vm4, %v4516_v14 }
0x1d3a   :  { %v2554_v40 = vmul.f32 %v2542_v51, %v2329_v39  ;;  %v3891_v50 = vpop.f32.mrb[79].mxu1 }
0x1d3c   :  { %3937 = vmatmul.mubr.f32.gmra.mrb[88].mxu1 %v2554_v40 }
0x1d3d   :  { %v2547_v6 = vpop.f32.mrb[80].mxu1  ;;  %3939 = vmatprep.mubr.msk.f32.mxu1 %vm4515_vm4, %v4516_v14 }
0x1d3e   :  { %v2555_v32 = vmul.f32 %v2547_v6, %v2330_v42  ;;  %v3894_v56 = vpop.f32.mrb[81].mxu1 }
0x1d40   :  { %3940 = vmatmul.mubr.f32.gmra.mrb[90].mxu1 %v2555_v32 }
0x1d41   :  { %3977 = vmatprep.mubr.msk.f32.mxu1 %vm4515_vm4, %v4516_v14 }
0x1e03   :  { %v2622_v43 = vpop.f32.mrb[82].mxu1 }
0x1e04   :  { %v3929_v54 = vpop.f32.mrb[83].mxu1  ;;  %v2623_v1 = vadd.f32 %v2622_v43, %v2352_v44 }
0x1e07   :  { %v2627_v58 = vpop.f32.mrb[84].mxu1 }
0x1e08   :  { %v2628_v45 = vadd.f32 %v2627_v58, %v2353_v63  ;;  %v3932_v46 = vpop.f32.mrb[85].mxu1 }
0x1e0a   :  { %v4993_v3 = vpack.i.bf16 %v2628_v45, %v2623_v1 }
0x1e0b   :  { %v2632_v49 = vpop.f32.mrb[86].mxu1 }
0x1e0c   :  { %4380 = vrot.lane.b32.xlu0 %v4993_v3, %s4518_s0  ;;  %v3935_v52 = vpop.f32.mrb[87].mxu1  ;;  %v2633_v55 = vadd.f32 %v2632_v49, %v2354_v8 }
0x1e0f   :  { %v2637_v62 = vpop.f32.mrb[88].mxu1 }
0x1e10   :  { %v2638_v13 = vadd.f32 %v2637_v62, %v2355_v53  ;;  %v3938_v59 = vpop.f32.mrb[89].mxu1 }
0x1e12   :  { %v4997_v60 = vpack.i.bf16 %v2638_v13, %v2633_v55 }
0x1e13   :  { %v2642_v61 = vpop.f32.mrb[90].mxu1 }
0x1e14   :  { %4385 = vrot.lane.b32.xlu1 %v4997_v60, %s4518_s0  ;;  %v5001_v19 = vadd.f32 %v2642_v61, %v2356_v5  ;;  %v3941_v2 = vpop.f32.mrb[91].mxu1 }
0x1e18   :  { %2659 = vrot.lane.b32.xlu1 %v5001_v19, %s4518_s0 }
0x1e7e   :  { %v4381_v17 = vpop.permute.xlu0 %4380 }
0x1e7f   :  { %v4383_v4 = vunpack.i.h.bf16 %v4381_v17  ;;  %v4382_v7 = vunpack.i.l.bf16 %v4381_v17 }
0x1e81   :  { %v4301_v21 = vpack.c.bf16 %v4383_v4, %v4382_v7 }
0x1e83   :  { %4303 = vmatpush3.bf16.xpose.msk.msra.mxu0 %vm4679_vm9, %v4301_v21 }
0x1e84   :  { %4304 = vmatprep.subr.bf16.mxu0 %v4514_v0 }
0x1e86   :  { %v4386_v11 = vpop.permute.xlu1 %4385 }
0x1e87   :  { %v4388_v25 = vunpack.i.h.bf16 %v4386_v11  ;;  %v4387_v12 = vunpack.i.l.bf16 %v4386_v11 }
0x1e89   :  { %v4305_v57 = vpack.c.bf16 %v4388_v25, %v4387_v12 }
0x1e8a   :  { %v2660_v9 = vpop.permute.xlu1 %2659 }
0x1e8b   :  { %4307 = vmatpush3.bf16.xpose.msk.msra.mxu0 %vm4679_vm9, %v4305_v57 }
0x1e8c   :  { %3950 = vmatprep.subr.mxu0 %v4516_v14 }
0x1e93   :  { %3951 = vmatpush3.xpose.msk.msra.mxu0 %vm133_vm1, %v2660_v9 }
0x1e96   :  { %3953 = vmatmul.mubr.msk.f32.vlgmr.msra.gmra.mrb[34].mxu0 %vm133_vm1, %v2623_v1 }
0x1e97   :  { %3955 = vmatprep.mubr.msk.f32.mxu0 %vm4515_vm4, %v4516_v14 }
0x1e9a   :  { %3956 = vmatmul.mubr.msk.f32.gmra.mrb[36].mxu0 %vm133_vm1, %v2628_v45 }
0x1e9b   :  { %3958 = vmatprep.mubr.msk.f32.mxu0 %vm4515_vm4, %v4516_v14 }
0x1e9e   :  { %3959 = vmatmul.mubr.msk.f32.gmra.mrb[38].mxu0 %vm133_vm1, %v2633_v55 }
0x1e9f   :  { %3961 = vmatprep.mubr.msk.f32.mxu0 %vm4515_vm4, %v4516_v14 }
0x1ea2   :  { %3962 = vmatmul.mubr.msk.f32.gmra.mrb[40].mxu0 %vm133_vm1, %v2638_v13 }
0x1ea3   :  { %3964 = vmatprep.mubr.msk.f32.mxu0 %vm4515_vm4, %v4516_v14 }
0x1ea6   :  { %3965 = vmatmul.mubr.msk.f32.gmra.mrb[42].mxu0 %vm133_vm1, %v5001_v19 }
0x1f69   :  { %v2747_v20 = vpop.f32.mrb[34].mxu0 }
0x1f6a   :  { %v2748_v16 = vadd.f32 %v2747_v20, %v2331_v41  ;;  %v3954_v22 = vpop.f32.mrb[35].mxu0 }
0x1f6c   :  { %v2771_v18 = vsel %vm698_vm10, %v2748_v16, -inf }
0x1f6d   :  { %2772 = vmax.xlane.f32.xlu1 %v2771_v18  ;;  %v2752_v23 = vpop.f32.mrb[36].mxu0 }
0x1f6e   :  { %v2753_v33 = vadd.f32 %v2752_v23, %v2332_v29  ;;  %v3957_v24 = vpop.f32.mrb[37].mxu0 }
0x1f70   :  { %v2774_v48 = vsel %vm698_vm10, %v2753_v33, -inf }
0x1f71   :  { %2775 = vmax.xlane.f32.xlu0 %v2774_v48  ;;  %v2757_v27 = vpop.f32.mrb[38].mxu0 }
0x1f72   :  { %v2758_v10 = vadd.f32 %v2757_v27, %v2333_v26  ;;  %v3960_v47 = vpop.f32.mrb[39].mxu0  ;;  %v2324_v27 = vld [vmem:[#allocation2 + $0x1b0] sm:$0xff] }
0x1f73   :  { %4002 = vmatprep.mubr.msk.f32.mxu0 %vm698_vm10, %v2324_v27 }
0x1f74   :  { %v2777_v15 = vsel %vm698_vm10, %v2758_v10, -inf }
0x1f75   :  { %2778 = vmax.xlane.f32.xlu0 %v2777_v15  ;;  %v2762_v35 = vpop.f32.mrb[40].mxu0 }
0x1f76   :  { %v2763_v28 = vadd.f32 %v2762_v35, %v2334_v37  ;;  %v3963_v30 = vpop.f32.mrb[41].mxu0 }
0x1f78   :  { %v2780_v34 = vsel %vm698_vm10, %v2763_v28, -inf }
0x1f79   :  { %2781 = vmax.xlane.f32.xlu0 %v2780_v34  ;;  %v2767_v38 = vpop.f32.mrb[42].mxu0 }
0x1f7a   :  { %v2768_v36 = vadd.f32 %v2767_v38, %v2335_v31  ;;  %v3966_v39 = vpop.f32.mrb[43].mxu0 }
0x1f7c   :  { %v2783_v51 = vsel %vm698_vm10, %v2768_v36, -inf }
0x1f7d   :  { %2784 = vmax.xlane.f32.xlu1 %v2783_v51  ;;  %v2359_v51 = vld [vmem:[#allocation2 + $0x5c8] sm:$0xff] }
0x1ffa   :  { %v2773_v40 = vpop.xlane.xlu1 %2772 }
0x1ffb   :  { %v2786_v50 = vsub.f32 %v2748_v16, %v2773_v40  ;;  %v2360_v40 = vld [vmem:[#allocation2 + $0x5d0] sm:$0xff] }
0x1ffd   :  { %v2791_v42 = vmul.f32 1.442695, %v2786_v50 }
0x1ffe   :  { %v2776_v6 = vpop.xlane.xlu0 %2775 }
0x1fff   :  { %4467 = vpow2.f32 %v2791_v42  ;;  %v2787_v32 = vsub.f32 %v2753_v33, %v2776_v6  ;;  %v2325_v6 = vld [vmem:[#allocation2 + $0x1b8] sm:$0x3] }
0x2001   :  { %v2793_v56 = vmul.f32 1.442695, %v2787_v32  ;;  %v4326_v32 = vpack.c.bf16 %v2360_v40, %v2359_v51 }
0x2002   :  { %v2779_v43 = vpop.xlane.xlu0 %2778 }
0x2003   :  { %4469 = vpow2.f32 %v2793_v56  ;;  %v2788_v54 = vsub.f32 %v2758_v10, %v2779_v43 }
0x2005   :  { %v2795_v44 = vmul.f32 1.442695, %v2788_v54  ;;  %v3211_v54 = vld [vmem:[#allocation2 + $0x5d8] ss:$0 sm:$0xff] }
0x2006   :  { %v2782_v52 = vpop.xlane.xlu0 %2781 }
0x2007   :  { %4471 = vpow2.f32 %v2795_v44  ;;  %v2789_v8 = vsub.f32 %v2763_v28, %v2782_v52 }
0x2009   :  { %v4468_v63 = vpop.eup %4467  ;;  %v2797_v62 = vmul.f32 1.442695, %v2789_v8 }
0x200a   :  { %v2801_v58 = vsel %vm698_vm10, %v4468_v63, 0.0  ;;  %v2785_v53 = vpop.xlane.xlu1 %2784 }
0x200b   :  { %2802 = vadd.xlane.f32.xlu0 %v2801_v58  ;;  %v2790_v55 = vsub.f32 %v2768_v36, %v2785_v53  ;;  %4473 = vpow2.f32 %v2797_v62  ;;  %v2357_v36 = vld [vmem:[#allocation2 + $0x5b8] sm:$0xff] }
0x200d   :  { %v4470_v1 = vpop.eup %4469  ;;  %v2799_v13 = vmul.f32 1.442695, %v2790_v55 }
0x200e   :  { %v2804_v45 = vsel %vm698_vm10, %v4470_v1, 0.0 }
0x200f   :  { %2805 = vadd.xlane.f32.xlu1 %v2804_v45  ;;  %4475 = vpow2.f32 %v2799_v13 }
0x2011   :  { %v4472_v46 = vpop.eup %4471 }
0x2012   :  { %v2807_v49 = vsel %vm698_vm10, %v4472_v46, 0.0 }
0x2013   :  { %2808 = vadd.xlane.f32.xlu0 %v2807_v49 }
0x2015   :  { %v4474_v59 = vpop.eup %4473 }
0x2016   :  { %v2810_v5 = vsel %vm698_vm10, %v4474_v59, 0.0 }
0x2019   :  { %v4476_v61 = vpop.eup %4475 }
0x201a   :  { %v2813_v2 = vsel %vm698_vm10, %v4476_v61, 0.0 }
0x2020   :  { %4395 = vrot.lane.b32.xlu1 %v4997_v60, %s4519_s26 }
0x2029   :  { %4390 = vrot.lane.b32.xlu0 %v4993_v3, %s4519_s26 }
0x2044   :  { %2811 = vadd.xlane.f32.xlu1 %v2810_v5 }
0x2048   :  { %2814 = vadd.xlane.f32.xlu1 %v2813_v2 }
0x2059   :  { %2834 = vrot.lane.b32.xlu1 %v5001_v19, %s4519_s26 }
0x2098   :  { %v2803_v3 = vpop.xlane.xlu0 %2802 }
0x2099   :  { %4477 = vrcp.f32 %v2803_v3 }
0x209c   :  { %v2806_v60 = vpop.xlane.xlu1 %2805 }
0x209d   :  { %4479 = vrcp.f32 %v2806_v60 }
0x20a0   :  { %v2809_v17 = vpop.xlane.xlu0 %2808  ;;  %v4396_v4 = vpop.permute.xlu1 %4395 }
0x20a1   :  { %v4398_v25 = vunpack.i.h.bf16 %v4396_v4  ;;  %v4397_v12 = vunpack.i.l.bf16 %v4396_v4  ;;  %4481 = vrcp.f32 %v2809_v17 }
0x20a3   :  { %v4312_v9 = vpack.c.bf16 %v4398_v25, %v4397_v12  ;;  %v4478_v20 = vpop.eup %4477 }
0x20a4   :  { %v4391_v7 = vpop.permute.xlu0 %4390  ;;  %v2821_v16 = vmul.f32 %v4478_v20, %v4468_v63 }
0x20a5   :  { %v4393_v21 = vunpack.i.h.bf16 %v4391_v7  ;;  %v4392_v11 = vunpack.i.l.bf16 %v4391_v7 }
0x20a7   :  { %v4309_v57 = vpack.c.bf16 %v4393_v21, %v4392_v11  ;;  %v4480_v29 = vpop.eup %4479 }
0x20a9   :  { %4310 = vmatpush3.bf16.msra.mxu1 %v4309_v57 }
0x20aa   :  { %4311 = vmatprep.subr.bf16.mxu1 %v4514_v0  ;;  %v2822_v0 = vmul.f32 %v4480_v29, %v4470_v1 }
0x20ab   :  { %v4482_v18 = vpop.eup %4481 }
0x20ac   :  { %v2823_v23 = vmul.f32 %v4482_v18, %v4472_v46 }
0x20ad   :  { %4313 = vmatpush3.bf16.msra.mxu1 %v4312_v9 }
0x20ae   :  { %3975 = vmatprep.subr.mxu1 %v4516_v14 }
0x20d1   :  { %v2812_v19 = vpop.xlane.xlu1 %2811 }
0x20d2   :  { %4483 = vrcp.f32 %v2812_v19 }
0x20d5   :  { %v2815_v41 = vpop.xlane.xlu1 %2814 }
0x20d6   :  { %4485 = vrcp.f32 %v2815_v41 }
0x20d9   :  { %v2835_v22 = vpop.permute.xlu1 %2834 }
0x20da   :  { %3976 = vmatpush3.msra.mxu1 %v2835_v22 }
0x20db   :  { %3978 = vmatmul.mubr.msk.f32.vlgmr.msra.gmra.mrb[92].mxu1 %vm698_vm10, %v2821_v16 }
0x20dc   :  { %3980 = vmatprep.mubr.msk.f32.mxu1 %vm4515_vm4, %v4516_v14  ;;  %v4484_v33 = vpop.eup %4483 }
0x20dd   :  { %v2824_v24 = vmul.f32 %v4484_v33, %v4474_v59 }
0x20df   :  { %3981 = vmatmul.mubr.msk.f32.gmra.mrb[94].mxu1 %vm698_vm10, %v2822_v0 }
0x20e0   :  { %3983 = vmatprep.mubr.msk.f32.mxu1 %vm4515_vm4, %v4516_v14  ;;  %v4486_v26 = vpop.eup %4485 }
0x20e1   :  { %v2825_v48 = vmul.f32 %v4486_v26, %v4476_v61 }
0x20e3   :  { %3984 = vmatmul.mubr.msk.f32.gmra.mrb[96].mxu1 %vm698_vm10, %v2823_v23 }
0x20e4   :  { %3986 = vmatprep.mubr.msk.f32.mxu1 %vm4515_vm4, %v4516_v14 }
0x20e7   :  { %3987 = vmatmul.mubr.msk.f32.gmra.mrb[98].mxu1 %vm698_vm10, %v2824_v24 }
0x20e8   :  { %3989 = vmatprep.mubr.msk.f32.mxu1 %vm4515_vm4, %v4516_v14  ;;  %v2358_v14 = vld [vmem:[#allocation2 + $0x5c0] sm:$0xff] }
0x20e9   :  { %v4322_v42 = vpack.c.bf16 %v2358_v14, %v2357_v36 }
0x20eb   :  { %3990 = vmatmul.mubr.msk.f32.gmra.mrb[100].mxu1 %vm698_vm10, %v2825_v48 }
0x21ae   :  { %v2922_v10 = vpop.f32.mrb[92].mxu1 }
0x21af   :  { %v3979_v47 = vpop.f32.mrb[93].mxu1 }
0x21b2   :  { %v2927_v37 = vpop.f32.mrb[94].mxu1 }
0x21b3   :  { %v4314_v15 = vpack.c.bf16 %v2927_v37, %v2922_v10  ;;  %v3982_v35 = vpop.f32.mrb[95].mxu1 }
0x21b5   :  { %4315 = vmatprep.subr.bf16.mxu0 %v4314_v15 }
0x21b6   :  { %v2932_v28 = vpop.f32.mrb[96].mxu1  ;;  %4317 = vmatpush3.bf16.msra.mxu0 %v4314_v15 }
0x21b7   :  { %v3985_v30 = vpop.f32.mrb[97].mxu1 }
0x21ba   :  { %v2937_v31 = vpop.f32.mrb[98].mxu1 }
0x21bb   :  { %v4318_v34 = vpack.c.bf16 %v2937_v31, %v2932_v28  ;;  %v3988_v38 = vpop.f32.mrb[99].mxu1 }
0x21bd   :  { %4319 = vmatprep.subr.bf16.mxu0 %v4318_v34 }
0x21be   :  { %v2942_v39 = vpop.f32.mrb[100].mxu1  ;;  %4321 = vmatpush3.bf16.msra.mxu0 %v4318_v34 }
0x21bf   :  { %v3991_v50 = vpop.f32.mrb[101].mxu1  ;;  %4000 = vmatprep.subr.mxu0 %v2942_v39 }
0x21c2   :  { %4001 = vmatpush3.msra.mxu0 %v2942_v39 }
0x21c3   :  { %4003 = vmatmul.mubr.msk.f32.vlgmr.msra.gmra.mrb[44].mxu0 %vm698_vm10, %v2325_v6  ;;  %4323 = vmatprep.subr.bf16.mxu0 %v4322_v42 }
0x21c4   :  { %4325 = vmatpush3.bf16.msra.mxu0 %v4322_v42 }
0x21c5   :  { %4327 = vmatprep.subr.bf16.mxu0 %v4326_v32 }
0x21c8   :  { %4329 = vmatpush3.bf16.msra.mxu0 %v4326_v32 }
0x2296   :  { %v4004_v56 = vpop.f32.mrb[44].mxu0 }
0x2297   :  { %v3018_v43 = vpop.f32.mrb[45].mxu0 }
0x2298   :  { %4013 = vmatprep.mubr.msk.f32.mxu0 %vm232_vm2, %v3018_v43 }
0x2299   :  { %4014 = vmatmul.mubr.msk.f32.vlgmr.msra.gmra.mrb[46].mxu0 %vm232_vm2, %v4004_v56 }
0x236c   :  { %v4015_v44 = vpop.f32.mrb[46].mxu0 }
0x236d   :  { %v3109_v63 = vadd.f32 %v4015_v44, %v3211_v54  ;;  %v3103_v58 = vpop.f32.mrb[47].mxu0 }
0x236e   :  { %v3104_v1 = vadd.f32 %v3211_v54, %v3103_v58 }
0x236f   :  { %3113 = vst.msk [vmem:[%s5071_s2 + $0x8] sm:$0x3] %vm236_vm3, %v3109_v63 }
0x2370   :  { %3112 = vst.msk [vmem:[%s5071_s2] sm:$0xff] %vm232_vm2, %v3104_v1 }
0x2371   :  { %3118 = vsyncpa [#allocation3], 1 }

</bundles_post_ra>
